<compile_context>
chip_gen: v7x
topology: tpu7x:2x2x1
jax: 0.10.0
libtpu: 0.0.40
codegen_flags: <defaults>
</compile_context>

<pallas_src>
from functools import partial

import numpy as np
import jax
import jax.numpy as jnp
from jax.experimental import pallas as pl
from jax.experimental.pallas import tpu as pltpu


# --------------------------- host-side weight preprocessing ---------------------------

def _build_toeplitz(w, s_in):
    """Block-Toeplitz matrices for a stride-2 / pad-1 / k=4 ConvTranspose2d.

    w: (Cin, Cout, 4, 4) numpy (PyTorch ConvTranspose2d weight layout).
    Returns G of shape (2, 2*s_in*Cin, 2*s_in*Cout) such that output full-row u = 2*i + r is
        Y_row(u) = concat(X_row[i+r-1], X_row[i+r]) @ G[r]
    with rows flattened channel-last as (w*Cin + ci) / (ow*Cout + co), and zero padding folded in.
    """
    cin, cout = w.shape[0], w.shape[1]
    lin, lout = s_in * cin, 2 * s_in * cout
    G = np.zeros((2, 2 * lin, lout), np.float32)
    for r in range(2):
        for a in range(2):
            kh = 3 - r - 2 * a
            for c in range(2):
                for b in range(2):
                    kw = 3 - c - 2 * b
                    for j in range(s_in):
                        wcol = j + c + b - 1
                        if 0 <= wcol < s_in:
                            G[r,
                              a * lin + wcol * cin: a * lin + (wcol + 1) * cin,
                              (2 * j + c) * cout: (2 * j + c + 1) * cout] += w[:, :, kh, kw]
    return G


def init_decoder_params(key, nz, nef, nc):
    ks = jax.random.split(key, 7)
    s = 0.05
    return {
        "lin_w": jax.random.normal(ks[0], (nef * 16, nz), jnp.float32) * s,  # PyTorch (out, in)
        "lin_b": jax.random.normal(ks[1], (nef * 16,), jnp.float32) * s,
        "ct1": jax.random.normal(ks[2], (nef * 16, nef * 8, 4, 4), jnp.float32) * s,
        "ct2": jax.random.normal(ks[3], (nef * 8, nef * 4, 4, 4), jnp.float32) * s,
        "ct3": jax.random.normal(ks[4], (nef * 4, nef * 2, 4, 4), jnp.float32) * s,
        "ct4": jax.random.normal(ks[5], (nef * 2, nef, 4, 4), jnp.float32) * s,
        "ct5": jax.random.normal(ks[6], (nef, nc, 4, 4), jnp.float32) * s,
    }


def prepare_decoder_params(params):
    """One-time host-side prep: transposes, Toeplitz expansion, bf16 cast for the MXU."""
    p = {k: np.asarray(v, np.float32) for k, v in params.items()}
    cin1, cout1 = p["ct1"].shape[0], p["ct1"].shape[1]
    wlin = jnp.asarray(p["lin_w"].T, jnp.bfloat16)                  # (nz, 16*nef)
    blin = jnp.asarray(p["lin_b"][None, :], jnp.float32)            # (1, 16*nef)
    # ct1 (1x1 -> 4x4, stride 1, pad 0) as one GEMM: w1b[ci, (kh*4+kw)*Cout + co] = w[ci,co,kh,kw]
    w1b = np.transpose(p["ct1"], (0, 2, 3, 1)).reshape(cin1, 16 * cout1)
    w1b = jnp.asarray(w1b, jnp.bfloat16)                            # (64, 512)
    g2 = jnp.asarray(_build_toeplitz(p["ct2"], 4), jnp.bfloat16)    # (2, 256, 128)
    g3 = jnp.asarray(_build_toeplitz(p["ct3"], 8), jnp.bfloat16)    # (2, 256, 128)
    g4 = jnp.asarray(_build_toeplitz(p["ct4"], 16), jnp.bfloat16)   # (2, 256, 128)
    g5 = _build_toeplitz(p["ct5"], 32)                              # (2, 256, 64*nc)
    # Pad the last Toeplitz's output columns to a 128-lane multiple (free MXU cycles on every
    # generation, makes the final store fully lane-dense / unmasked).
    pad = (-g5.shape[2]) % 128
    g5 = jnp.asarray(np.pad(g5, ((0, 0), (0, 0), (0, pad))), jnp.bfloat16)
    return (wlin, blin, w1b, g2, g3, g4, g5)


# ---------------------------------- Pallas kernel -------------------------------------
#
# Activation representation between stride-2 layers ("phase-grouped with halo"):
#   Xg has shape (P+2, R, Lin) with R = 4*Bt rows ordered j = m*Bt + b  (m = coarse row 0..3,
#   b = sample within the tile).  Xg[t][j] = X_full[b, P*m + (t-1), :] channel-last, with
#   Xg[0] / Xg[P+1] being the per-sample zero-halo taps (t = -1 / t = P).

def _deconv_s2(xg, g_ref):
    """One stride-2 / pad-1 / k=4 ConvTranspose2d + ReLU.  One GEMM per output row phase."""
    pp2, R, lin = xg.shape
    P = pp2 - 2
    s0 = xg[0:P].reshape(P * R, lin)            # taps s-1   (phase 0 left)
    s1 = xg[1:P + 1].reshape(P * R, lin)        # taps s     (phase 0 right / phase 1 left)
    s2 = xg[2:P + 2].reshape(P * R, lin)        # taps s+1   (phase 1 right)
    a0 = jnp.concatenate([s0, s1], axis=1)      # (P*R, 2*lin) bf16
    a1 = jnp.concatenate([s1, s2], axis=1)
    y0 = jnp.maximum(jnp.dot(a0, g_ref[0], preferred_element_type=jnp.float32), 0.0)
    y1 = jnp.maximum(jnp.dot(a1, g_ref[1], preferred_element_type=jnp.float32), 0.0)
    # y_r row s*R + j  ->  new group (2*s + r), row j.
    return y0, y1


def _regroup(y0, y1, P, R, bt):
    """Build the next layer's halo-padded phase-group slab (bf16, single cast)."""
    L = y0.shape[1]
    y0 = y0.astype(jnp.bfloat16).reshape(P, R, L)
    y1 = y1.astype(jnp.bfloat16).reshape(P, R, L)
    inter = jnp.stack([y0, y1], axis=1).reshape(2 * P, R, L)     # groups 0..2P-1 in order
    z = jnp.zeros((1, bt, L), jnp.bfloat16)
    lo = jnp.concatenate([z, y1[P - 1:P, :R - bt, :]], axis=1)   # tap -1: group 2P-1 shifted by Bt
    hi = jnp.concatenate([y0[0:1, bt:, :], z], axis=1)           # tap 2P: group 0 shifted by Bt
    return jnp.concatenate([lo, inter, hi], axis=0)              # (2P+2, R, L)


def _decoder_kernel(x_ref, wlin_ref, blin_ref, w1_ref,
                    g2_ref, g3_ref, g4_ref, g5_ref, out_ref):
    bt = x_ref.shape[1]
    R = 4 * bt
    L = 128

    # Linear + bias + ReLU (ReLU after View is elementwise, fused here).
    xv = x_ref[0].astype(jnp.bfloat16)                                     # (bt, nz)
    h = jnp.dot(xv, wlin_ref[...], preferred_element_type=jnp.float32)
    h = jnp.maximum(h + blin_ref[...], 0.0).astype(jnp.bfloat16)           # (bt, 64)

    # ct1: 1x1 -> 4x4 (stride 1, pad 0) as ONE GEMM; 128-lane slices give the 4 output rows.
    h1 = jnp.dot(h, w1_ref[...], preferred_element_type=jnp.float32)       # (bt, 512)
    h1 = jnp.maximum(h1, 0.0).astype(jnp.bfloat16)

    # group0[m*bt + b, :] = row m of sample b (channel-last, width*Cout = 128 lanes).
    g0 = jnp.concatenate([h1[:, m * L:(m + 1) * L] for m in range(4)], axis=0)   # (R, 128)
    z = jnp.zeros((bt, L), jnp.bfloat16)
    lo = jnp.concatenate([z, g0[:R - bt, :]], axis=0)
    hi = jnp.concatenate([g0[bt:, :], z], axis=0)
    xg = jnp.stack([lo, g0, hi], axis=0)                                   # (3, R, 128), P = 1

    # ct2..ct5 (stride 2, pad 1, k=4); phase groups double each layer: 1 -> 2 -> 4 -> 8 -> 16.
    y0, y1 = _deconv_s2(xg, g2_ref); xg = _regroup(y0, y1, 1, R, bt)
    y0, y1 = _deconv_s2(xg, g3_ref); xg = _regroup(y0, y1, 2, R, bt)
    y0, y1 = _deconv_s2(xg, g4_ref); xg = _regroup(y0, y1, 4, R, bt)
    y0, y1 = _deconv_s2(xg, g5_ref)                                        # (8*R, 256) f32 each

    # Direct, lane-dense, sublane-aligned stores (no final concat).
    out_ref[0, 0] = y0.astype(out_ref.dtype)
    out_ref[0, 1] = y1.astype(out_ref.dtype)


# ------------------------------------- wrapper ----------------------------------------

@partial(jax.jit, static_argnames=("nc", "bt"))
def decoder_forward(x, prep, *, nc, bt=8):
    wlin, blin, w1b, g2, g3, g4, g5 = prep
    B, nz = x.shape
    assert bt % 2 == 0, "bt must be even (keeps the 4*bt row dimension sublane-aligned)"
    T = pl.cdiv(B, bt)
    Bp = T * bt
    if Bp != B:
        x = jnp.pad(x, ((0, Bp - B), (0, 0)))
    xt = x.reshape(T, bt, nz)
    R = 4 * bt
    out_cols = g5.shape[2]            # 256 (lane-padded); valid part is 64*nc

    raw = pl.pallas_call(
        _decoder_kernel,
        out_shape=jax.ShapeDtypeStruct((T, 2, 8 * R, out_cols), jnp.float32),
        grid=(T,),
        in_specs=[
            pl.BlockSpec((1, bt, nz), lambda t: (t, 0, 0)),
            pl.BlockSpec(wlin.shape, lambda t: (0, 0)),
            pl.BlockSpec(blin.shape, lambda t: (0, 0)),
            pl.BlockSpec(w1b.shape, lambda t: (0, 0)),
            pl.BlockSpec(g2.shape, lambda t: (0, 0, 0)),
            pl.BlockSpec(g3.shape, lambda t: (0, 0, 0)),
            pl.BlockSpec(g4.shape, lambda t: (0, 0, 0)),
            pl.BlockSpec(g5.shape, lambda t: (0, 0, 0)),
        ],
        out_specs=pl.BlockSpec((1, 2, 8 * R, out_cols), lambda t: (t, 0, 0, 0)),
        compiler_params=pltpu.CompilerParams(dimension_semantics=("parallel",)),
    )(xt, wlin, blin, w1b, g2, g3, g4, g5)

    # raw[t, r, s*R + m*bt + b, w*nc + c] == Y[t*bt + b, c, 16*m + 2*s + r, w]
    raw = raw[..., :64 * nc].reshape(T, 2, 8, 4, bt, 64, nc)       # (t, r, s, m, b, w, c)
    y = jnp.transpose(raw, (0, 4, 6, 3, 2, 1, 5))                  # (t, b, c, m, s, r, w)
    y = y.reshape(T * bt, nc, 64, 64)
    return y[:B]


# ------------------------------- numpy reference check --------------------------------

def _ct_ref(x, w, s, p):
    B, Cin, H, W = x.shape
    _, Cout, K, _ = w.shape
    full = np.zeros((B, Cout, (H - 1) * s + K, (W - 1) * s + K), np.float32)
    for kh in range(K):
        for kw in range(K):
            contrib = np.einsum("bchw,cd->bdhw", x, w[:, :, kh, kw])
            full[:, :, kh:kh + (H - 1) * s + 1:s, kw:kw + (W - 1) * s + 1:s] += contrib
    Ho = (H - 1) * s - 2 * p + K
    Wo = (W - 1) * s - 2 * p + K
    return full[:, :, p:p + Ho, p:p + Wo]


def decoder_ref(x, params):
    x = np.asarray(x)
    p = {k: np.asarray(v) for k, v in params.items()}
    h = np.maximum(x @ p["lin_w"].T + p["lin_b"], 0.0)
    h = h.reshape(x.shape[0], -1, 1, 1).astype(np.float32)
    for name, (s, pd) in [("ct1", (1, 0)), ("ct2", (2, 1)), ("ct3", (2, 1)),
                          ("ct4", (2, 1)), ("ct5", (2, 1))]:
        h = np.maximum(_ct_ref(h, p[name], s, pd), 0.0)
    return h


# --------------------------------------- main -----------------------------------------

if __name__ == "__main__":
    nz, nef, nc, B, bt = 32, 4, 3, 8, 4            # grid = 2 batch tiles -> both v7x TCs busy
    key = jax.random.PRNGKey(0)
    kx, kp = jax.random.split(key)
    x = jax.random.normal(kx, (B, nz), jnp.float32)
    params = init_decoder_params(kp, nz, nef, nc)
    prep = prepare_decoder_params(params)

    out = decoder_forward(x, prep, nc=nc, bt=bt)
    out = jax.block_until_ready(out)
    assert out.shape == (B, nc, 64, 64), out.shape

    ref = decoder_ref(x, params)
    out_np = np.asarray(out, np.float32)
    scale = float(np.max(np.abs(ref))) + 1e-12
    # bf16 MXU operands with f32 accumulation: allow ~a few % of the output dynamic range.
    np.testing.assert_allclose(out_np, ref, rtol=0.1, atol=0.05 * scale)

    print("KERNEL_OK")
</pallas_src>

<mosaic_0001>
module attributes {stable_mosaic.version = 11 : i64} {
  func.func @_decoder_kernel(%arg0: i32, %arg1: memref<1x4x32xf32, #tpu.memory_space<vmem>>, %arg2: memref<32x64xbf16, #tpu.memory_space<vmem>>, %arg3: memref<1x64xf32, #tpu.memory_space<vmem>>, %arg4: memref<64x512xbf16, #tpu.memory_space<vmem>>, %arg5: memref<2x256x128xbf16, #tpu.memory_space<vmem>>, %arg6: memref<2x256x128xbf16, #tpu.memory_space<vmem>>, %arg7: memref<2x256x128xbf16, #tpu.memory_space<vmem>>, %arg8: memref<2x256x256xbf16, #tpu.memory_space<vmem>>, %arg9: memref<1x2x128x256xf32, #tpu.memory_space<vmem>>) attributes {dimension_semantics = [#tpu.dimension_semantics<parallel>], iteration_bounds = array<i64: 2>, scalar_prefetch = 0 : i64, scratch_operands = 0 : i64, tpu.core_type = #tpu.core_type<tc>, window_params = [{transform_indices = @transform_0, window_bounds = array<i64: 1, 4, 32>}, {pipeline_mode = #tpu.pipeline_mode<synchronous>, transform_indices = @transform_1, window_bounds = array<i64: 32, 64>}, {pipeline_mode = #tpu.pipeline_mode<synchronous>, transform_indices = @transform_2, window_bounds = array<i64: 1, 64>}, {pipeline_mode = #tpu.pipeline_mode<synchronous>, transform_indices = @transform_3, window_bounds = array<i64: 64, 512>}, {pipeline_mode = #tpu.pipeline_mode<synchronous>, transform_indices = @transform_4, window_bounds = array<i64: 2, 256, 128>}, {pipeline_mode = #tpu.pipeline_mode<synchronous>, transform_indices = @transform_5, window_bounds = array<i64: 2, 256, 128>}, {pipeline_mode = #tpu.pipeline_mode<synchronous>, transform_indices = @transform_6, window_bounds = array<i64: 2, 256, 128>}, {pipeline_mode = #tpu.pipeline_mode<synchronous>, transform_indices = @transform_7, window_bounds = array<i64: 2, 256, 256>}, {transform_indices = @transform_8, window_bounds = array<i64: 1, 2, 128, 256>}]} {
    %c0 = arith.constant 0 : index
    %c0_0 = arith.constant 0 : index
    %c0_1 = arith.constant 0 : index
    %0 = vector.load %arg1[%c0, %c0_0, %c0_1] : memref<1x4x32xf32, #tpu.memory_space<vmem>>, vector<1x4x32xf32>
    %1 = vector.shape_cast %0 : vector<1x4x32xf32> to vector<4x32xf32>
    %2 = arith.truncf %1 : vector<4x32xf32> to vector<4x32xbf16>
    %c0_2 = arith.constant 0 : index
    %c0_3 = arith.constant 0 : index
    %3 = vector.load %arg2[%c0_2, %c0_3] : memref<32x64xbf16, #tpu.memory_space<vmem>>, vector<32x64xbf16>
    %cst = arith.constant dense<0.000000e+00> : vector<4x64xf32>
    %4 = tpu.matmul %2, %3, %cst {dimension_numbers = #tpu.dot_dimension_numbers<[1], [0], [0], [1], [0, 0, 1, 1], [], []>} : vector<4x32xbf16>, vector<32x64xbf16>, vector<4x64xf32> -> vector<4x64xf32>
    %c0_4 = arith.constant 0 : index
    %c0_5 = arith.constant 0 : index
    %5 = vector.load %arg3[%c0_4, %c0_5] : memref<1x64xf32, #tpu.memory_space<vmem>>, vector<1x64xf32>
    %6 = vector.broadcast %5 : vector<1x64xf32> to vector<4x64xf32>
    %7 = arith.addf %4, %6 : vector<4x64xf32>
    %cst_6 = arith.constant 0.000000e+00 : f32
    %8 = vector.broadcast %cst_6 : f32 to vector<4x64xf32>
    %9 = arith.maximumf %7, %8 : vector<4x64xf32>
    %10 = arith.truncf %9 : vector<4x64xf32> to vector<4x64xbf16>
    %c0_7 = arith.constant 0 : index
    %c0_8 = arith.constant 0 : index
    %11 = vector.load %arg4[%c0_7, %c0_8] : memref<64x512xbf16, #tpu.memory_space<vmem>>, vector<64x512xbf16>
    %cst_9 = arith.constant dense<0.000000e+00> : vector<4x512xf32>
    %12 = tpu.matmul %10, %11, %cst_9 {dimension_numbers = #tpu.dot_dimension_numbers<[1], [0], [0], [1], [0, 0, 1, 1], [], []>} : vector<4x64xbf16>, vector<64x512xbf16>, vector<4x512xf32> -> vector<4x512xf32>
    %cst_10 = arith.constant 0.000000e+00 : f32
    %13 = vector.broadcast %cst_10 : f32 to vector<4x512xf32>
    %14 = arith.maximumf %12, %13 : vector<4x512xf32>
    %15 = arith.truncf %14 : vector<4x512xf32> to vector<4x512xbf16>
    %16 = vector.extract_strided_slice %15 {offsets = [0, 0], sizes = [4, 128], strides = [1, 1]} : vector<4x512xbf16> to vector<4x128xbf16>
    %17 = vector.extract_strided_slice %15 {offsets = [0, 128], sizes = [4, 128], strides = [1, 1]} : vector<4x512xbf16> to vector<4x128xbf16>
    %18 = vector.extract_strided_slice %15 {offsets = [0, 256], sizes = [4, 128], strides = [1, 1]} : vector<4x512xbf16> to vector<4x128xbf16>
    %19 = vector.extract_strided_slice %15 {offsets = [0, 384], sizes = [4, 128], strides = [1, 1]} : vector<4x512xbf16> to vector<4x128xbf16>
    %20 = tpu.concatenate %16, %17, %18, %19 in 0 : vector<4x128xbf16>, vector<4x128xbf16>, vector<4x128xbf16>, vector<4x128xbf16> -> vector<16x128xbf16>
    %cst_11 = arith.constant 0.000000e+00 : bf16
    %21 = vector.broadcast %cst_11 : bf16 to vector<4x128xbf16>
    %22 = vector.extract_strided_slice %20 {offsets = [0, 0], sizes = [12, 128], strides = [1, 1]} : vector<16x128xbf16> to vector<12x128xbf16>
    %23 = tpu.concatenate %21, %22 in 0 : vector<4x128xbf16>, vector<12x128xbf16> -> vector<16x128xbf16>
    %24 = vector.extract_strided_slice %20 {offsets = [4, 0], sizes = [12, 128], strides = [1, 1]} : vector<16x128xbf16> to vector<12x128xbf16>
    %25 = tpu.concatenate %24, %21 in 0 : vector<12x128xbf16>, vector<4x128xbf16> -> vector<16x128xbf16>
    %26 = vector.shape_cast %23 : vector<16x128xbf16> to vector<1x16x128xbf16>
    %27 = vector.shape_cast %20 : vector<16x128xbf16> to vector<1x16x128xbf16>
    %28 = vector.shape_cast %25 : vector<16x128xbf16> to vector<1x16x128xbf16>
    %29 = tpu.concatenate %26, %27, %28 in 0 : vector<1x16x128xbf16>, vector<1x16x128xbf16>, vector<1x16x128xbf16> -> vector<3x16x128xbf16>
    %30 = vector.extract_strided_slice %29 {offsets = [0, 0, 0], sizes = [1, 16, 128], strides = [1, 1, 1]} : vector<3x16x128xbf16> to vector<1x16x128xbf16>
    %31 = vector.shape_cast %30 : vector<1x16x128xbf16> to vector<16x128xbf16>
    %32 = vector.extract_strided_slice %29 {offsets = [1, 0, 0], sizes = [1, 16, 128], strides = [1, 1, 1]} : vector<3x16x128xbf16> to vector<1x16x128xbf16>
    %33 = vector.shape_cast %32 : vector<1x16x128xbf16> to vector<16x128xbf16>
    %34 = vector.extract_strided_slice %29 {offsets = [2, 0, 0], sizes = [1, 16, 128], strides = [1, 1, 1]} : vector<3x16x128xbf16> to vector<1x16x128xbf16>
    %35 = vector.shape_cast %34 : vector<1x16x128xbf16> to vector<16x128xbf16>
    %36 = tpu.concatenate %31, %33 in 1 : vector<16x128xbf16>, vector<16x128xbf16> -> vector<16x256xbf16>
    %37 = tpu.concatenate %33, %35 in 1 : vector<16x128xbf16>, vector<16x128xbf16> -> vector<16x256xbf16>
    %c0_12 = arith.constant 0 : index
    %c0_13 = arith.constant 0 : index
    %c0_14 = arith.constant 0 : index
    %38 = vector.load %arg5[%c0_12, %c0_13, %c0_14] : memref<2x256x128xbf16, #tpu.memory_space<vmem>>, vector<1x256x128xbf16>
    %39 = vector.shape_cast %38 : vector<1x256x128xbf16> to vector<256x128xbf16>
    %cst_15 = arith.constant dense<0.000000e+00> : vector<16x128xf32>
    %40 = tpu.matmul %36, %39, %cst_15 {dimension_numbers = #tpu.dot_dimension_numbers<[1], [0], [0], [1], [0, 0, 1, 1], [], []>} : vector<16x256xbf16>, vector<256x128xbf16>, vector<16x128xf32> -> vector<16x128xf32>
    %cst_16 = arith.constant 0.000000e+00 : f32
    %41 = vector.broadcast %cst_16 : f32 to vector<16x128xf32>
    %42 = arith.maximumf %40, %41 : vector<16x128xf32>
    %c1 = arith.constant 1 : index
    %c0_17 = arith.constant 0 : index
    %c0_18 = arith.constant 0 : index
    %43 = vector.load %arg5[%c1, %c0_17, %c0_18] : memref<2x256x128xbf16, #tpu.memory_space<vmem>>, vector<1x256x128xbf16>
    %44 = vector.shape_cast %43 : vector<1x256x128xbf16> to vector<256x128xbf16>
    %cst_19 = arith.constant dense<0.000000e+00> : vector<16x128xf32>
    %45 = tpu.matmul %37, %44, %cst_19 {dimension_numbers = #tpu.dot_dimension_numbers<[1], [0], [0], [1], [0, 0, 1, 1], [], []>} : vector<16x256xbf16>, vector<256x128xbf16>, vector<16x128xf32> -> vector<16x128xf32>
    %cst_20 = arith.constant 0.000000e+00 : f32
    %46 = vector.broadcast %cst_20 : f32 to vector<16x128xf32>
    %47 = arith.maximumf %45, %46 : vector<16x128xf32>
    %48 = arith.truncf %42 : vector<16x128xf32> to vector<16x128xbf16>
    %49 = vector.shape_cast %48 : vector<16x128xbf16> to vector<1x16x128xbf16>
    %50 = arith.truncf %47 : vector<16x128xf32> to vector<16x128xbf16>
    %51 = vector.shape_cast %50 : vector<16x128xbf16> to vector<1x16x128xbf16>
    %52 = vector.shape_cast %49 : vector<1x16x128xbf16> to vector<1x1x16x128xbf16>
    %53 = vector.shape_cast %51 : vector<1x16x128xbf16> to vector<1x1x16x128xbf16>
    %54 = tpu.concatenate %52, %53 in 1 : vector<1x1x16x128xbf16>, vector<1x1x16x128xbf16> -> vector<1x2x16x128xbf16>
    %55 = vector.shape_cast %54 : vector<1x2x16x128xbf16> to vector<2x16x128xbf16>
    %cst_21 = arith.constant 0.000000e+00 : bf16
    %56 = vector.broadcast %cst_21 : bf16 to vector<1x4x128xbf16>
    %57 = vector.extract_strided_slice %51 {offsets = [0, 0, 0], sizes = [1, 12, 128], strides = [1, 1, 1]} : vector<1x16x128xbf16> to vector<1x12x128xbf16>
    %58 = tpu.concatenate %56, %57 in 1 : vector<1x4x128xbf16>, vector<1x12x128xbf16> -> vector<1x16x128xbf16>
    %59 = vector.extract_strided_slice %49 {offsets = [0, 4, 0], sizes = [1, 12, 128], strides = [1, 1, 1]} : vector<1x16x128xbf16> to vector<1x12x128xbf16>
    %60 = tpu.concatenate %59, %56 in 1 : vector<1x12x128xbf16>, vector<1x4x128xbf16> -> vector<1x16x128xbf16>
    %61 = tpu.concatenate %58, %55, %60 in 0 : vector<1x16x128xbf16>, vector<2x16x128xbf16>, vector<1x16x128xbf16> -> vector<4x16x128xbf16>
    %62 = vector.extract_strided_slice %61 {offsets = [0, 0, 0], sizes = [2, 16, 128], strides = [1, 1, 1]} : vector<4x16x128xbf16> to vector<2x16x128xbf16>
    %63 = vector.shape_cast %62 : vector<2x16x128xbf16> to vector<32x128xbf16>
    %64 = vector.extract_strided_slice %61 {offsets = [1, 0, 0], sizes = [2, 16, 128], strides = [1, 1, 1]} : vector<4x16x128xbf16> to vector<2x16x128xbf16>
    %65 = vector.shape_cast %64 : vector<2x16x128xbf16> to vector<32x128xbf16>
    %66 = vector.extract_strided_slice %61 {offsets = [2, 0, 0], sizes = [2, 16, 128], strides = [1, 1, 1]} : vector<4x16x128xbf16> to vector<2x16x128xbf16>
    %67 = vector.shape_cast %66 : vector<2x16x128xbf16> to vector<32x128xbf16>
    %68 = tpu.concatenate %63, %65 in 1 : vector<32x128xbf16>, vector<32x128xbf16> -> vector<32x256xbf16>
    %69 = tpu.concatenate %65, %67 in 1 : vector<32x128xbf16>, vector<32x128xbf16> -> vector<32x256xbf16>
    %c0_22 = arith.constant 0 : index
    %c0_23 = arith.constant 0 : index
    %c0_24 = arith.constant 0 : index
    %70 = vector.load %arg6[%c0_22, %c0_23, %c0_24] : memref<2x256x128xbf16, #tpu.memory_space<vmem>>, vector<1x256x128xbf16>
    %71 = vector.shape_cast %70 : vector<1x256x128xbf16> to vector<256x128xbf16>
    %cst_25 = arith.constant dense<0.000000e+00> : vector<32x128xf32>
    %72 = tpu.matmul %68, %71, %cst_25 {dimension_numbers = #tpu.dot_dimension_numbers<[1], [0], [0], [1], [0, 0, 1, 1], [], []>} : vector<32x256xbf16>, vector<256x128xbf16>, vector<32x128xf32> -> vector<32x128xf32>
    %cst_26 = arith.constant 0.000000e+00 : f32
    %73 = vector.broadcast %cst_26 : f32 to vector<32x128xf32>
    %74 = arith.maximumf %72, %73 : vector<32x128xf32>
    %c1_27 = arith.constant 1 : index
    %c0_28 = arith.constant 0 : index
    %c0_29 = arith.constant 0 : index
    %75 = vector.load %arg6[%c1_27, %c0_28, %c0_29] : memref<2x256x128xbf16, #tpu.memory_space<vmem>>, vector<1x256x128xbf16>
    %76 = vector.shape_cast %75 : vector<1x256x128xbf16> to vector<256x128xbf16>
    %cst_30 = arith.constant dense<0.000000e+00> : vector<32x128xf32>
    %77 = tpu.matmul %69, %76, %cst_30 {dimension_numbers = #tpu.dot_dimension_numbers<[1], [0], [0], [1], [0, 0, 1, 1], [], []>} : vector<32x256xbf16>, vector<256x128xbf16>, vector<32x128xf32> -> vector<32x128xf32>
    %cst_31 = arith.constant 0.000000e+00 : f32
    %78 = vector.broadcast %cst_31 : f32 to vector<32x128xf32>
    %79 = arith.maximumf %77, %78 : vector<32x128xf32>
    %80 = arith.truncf %74 : vector<32x128xf32> to vector<32x128xbf16>
    %81 = vector.shape_cast %80 : vector<32x128xbf16> to vector<2x16x128xbf16>
    %82 = arith.truncf %79 : vector<32x128xf32> to vector<32x128xbf16>
    %83 = vector.shape_cast %82 : vector<32x128xbf16> to vector<2x16x128xbf16>
    %84 = vector.shape_cast %81 : vector<2x16x128xbf16> to vector<2x1x16x128xbf16>
    %85 = vector.shape_cast %83 : vector<2x16x128xbf16> to vector<2x1x16x128xbf16>
    %86 = tpu.concatenate %84, %85 in 1 : vector<2x1x16x128xbf16>, vector<2x1x16x128xbf16> -> vector<2x2x16x128xbf16>
    %87 = vector.shape_cast %86 : vector<2x2x16x128xbf16> to vector<4x16x128xbf16>
    %cst_32 = arith.constant 0.000000e+00 : bf16
    %88 = vector.broadcast %cst_32 : bf16 to vector<1x4x128xbf16>
    %89 = vector.extract_strided_slice %83 {offsets = [1, 0, 0], sizes = [1, 12, 128], strides = [1, 1, 1]} : vector<2x16x128xbf16> to vector<1x12x128xbf16>
    %90 = tpu.concatenate %88, %89 in 1 : vector<1x4x128xbf16>, vector<1x12x128xbf16> -> vector<1x16x128xbf16>
    %91 = vector.extract_strided_slice %81 {offsets = [0, 4, 0], sizes = [1, 12, 128], strides = [1, 1, 1]} : vector<2x16x128xbf16> to vector<1x12x128xbf16>
    %92 = tpu.concatenate %91, %88 in 1 : vector<1x12x128xbf16>, vector<1x4x128xbf16> -> vector<1x16x128xbf16>
    %93 = tpu.concatenate %90, %87, %92 in 0 : vector<1x16x128xbf16>, vector<4x16x128xbf16>, vector<1x16x128xbf16> -> vector<6x16x128xbf16>
    %94 = vector.extract_strided_slice %93 {offsets = [0, 0, 0], sizes = [4, 16, 128], strides = [1, 1, 1]} : vector<6x16x128xbf16> to vector<4x16x128xbf16>
    %95 = vector.shape_cast %94 : vector<4x16x128xbf16> to vector<64x128xbf16>
    %96 = vector.extract_strided_slice %93 {offsets = [1, 0, 0], sizes = [4, 16, 128], strides = [1, 1, 1]} : vector<6x16x128xbf16> to vector<4x16x128xbf16>
    %97 = vector.shape_cast %96 : vector<4x16x128xbf16> to vector<64x128xbf16>
    %98 = vector.extract_strided_slice %93 {offsets = [2, 0, 0], sizes = [4, 16, 128], strides = [1, 1, 1]} : vector<6x16x128xbf16> to vector<4x16x128xbf16>
    %99 = vector.shape_cast %98 : vector<4x16x128xbf16> to vector<64x128xbf16>
    %100 = tpu.concatenate %95, %97 in 1 : vector<64x128xbf16>, vector<64x128xbf16> -> vector<64x256xbf16>
    %101 = tpu.concatenate %97, %99 in 1 : vector<64x128xbf16>, vector<64x128xbf16> -> vector<64x256xbf16>
    %c0_33 = arith.constant 0 : index
    %c0_34 = arith.constant 0 : index
    %c0_35 = arith.constant 0 : index
    %102 = vector.load %arg7[%c0_33, %c0_34, %c0_35] : memref<2x256x128xbf16, #tpu.memory_space<vmem>>, vector<1x256x128xbf16>
    %103 = vector.shape_cast %102 : vector<1x256x128xbf16> to vector<256x128xbf16>
    %cst_36 = arith.constant dense<0.000000e+00> : vector<64x128xf32>
    %104 = tpu.matmul %100, %103, %cst_36 {dimension_numbers = #tpu.dot_dimension_numbers<[1], [0], [0], [1], [0, 0, 1, 1], [], []>} : vector<64x256xbf16>, vector<256x128xbf16>, vector<64x128xf32> -> vector<64x128xf32>
    %cst_37 = arith.constant 0.000000e+00 : f32
    %105 = vector.broadcast %cst_37 : f32 to vector<64x128xf32>
    %106 = arith.maximumf %104, %105 : vector<64x128xf32>
    %c1_38 = arith.constant 1 : index
    %c0_39 = arith.constant 0 : index
    %c0_40 = arith.constant 0 : index
    %107 = vector.load %arg7[%c1_38, %c0_39, %c0_40] : memref<2x256x128xbf16, #tpu.memory_space<vmem>>, vector<1x256x128xbf16>
    %108 = vector.shape_cast %107 : vector<1x256x128xbf16> to vector<256x128xbf16>
    %cst_41 = arith.constant dense<0.000000e+00> : vector<64x128xf32>
    %109 = tpu.matmul %101, %108, %cst_41 {dimension_numbers = #tpu.dot_dimension_numbers<[1], [0], [0], [1], [0, 0, 1, 1], [], []>} : vector<64x256xbf16>, vector<256x128xbf16>, vector<64x128xf32> -> vector<64x128xf32>
    %cst_42 = arith.constant 0.000000e+00 : f32
    %110 = vector.broadcast %cst_42 : f32 to vector<64x128xf32>
    %111 = arith.maximumf %109, %110 : vector<64x128xf32>
    %112 = arith.truncf %106 : vector<64x128xf32> to vector<64x128xbf16>
    %113 = vector.shape_cast %112 : vector<64x128xbf16> to vector<4x16x128xbf16>
    %114 = arith.truncf %111 : vector<64x128xf32> to vector<64x128xbf16>
    %115 = vector.shape_cast %114 : vector<64x128xbf16> to vector<4x16x128xbf16>
    %116 = vector.shape_cast %113 : vector<4x16x128xbf16> to vector<4x1x16x128xbf16>
    %117 = vector.shape_cast %115 : vector<4x16x128xbf16> to vector<4x1x16x128xbf16>
    %118 = tpu.concatenate %116, %117 in 1 : vector<4x1x16x128xbf16>, vector<4x1x16x128xbf16> -> vector<4x2x16x128xbf16>
    %119 = vector.shape_cast %118 : vector<4x2x16x128xbf16> to vector<8x16x128xbf16>
    %cst_43 = arith.constant 0.000000e+00 : bf16
    %120 = vector.broadcast %cst_43 : bf16 to vector<1x4x128xbf16>
    %121 = vector.extract_strided_slice %115 {offsets = [3, 0, 0], sizes = [1, 12, 128], strides = [1, 1, 1]} : vector<4x16x128xbf16> to vector<1x12x128xbf16>
    %122 = tpu.concatenate %120, %121 in 1 : vector<1x4x128xbf16>, vector<1x12x128xbf16> -> vector<1x16x128xbf16>
    %123 = vector.extract_strided_slice %113 {offsets = [0, 4, 0], sizes = [1, 12, 128], strides = [1, 1, 1]} : vector<4x16x128xbf16> to vector<1x12x128xbf16>
    %124 = tpu.concatenate %123, %120 in 1 : vector<1x12x128xbf16>, vector<1x4x128xbf16> -> vector<1x16x128xbf16>
    %125 = tpu.concatenate %122, %119, %124 in 0 : vector<1x16x128xbf16>, vector<8x16x128xbf16>, vector<1x16x128xbf16> -> vector<10x16x128xbf16>
    %126 = vector.extract_strided_slice %125 {offsets = [0, 0, 0], sizes = [8, 16, 128], strides = [1, 1, 1]} : vector<10x16x128xbf16> to vector<8x16x128xbf16>
    %127 = vector.shape_cast %126 : vector<8x16x128xbf16> to vector<128x128xbf16>
    %128 = vector.extract_strided_slice %125 {offsets = [1, 0, 0], sizes = [8, 16, 128], strides = [1, 1, 1]} : vector<10x16x128xbf16> to vector<8x16x128xbf16>
    %129 = vector.shape_cast %128 : vector<8x16x128xbf16> to vector<128x128xbf16>
    %130 = vector.extract_strided_slice %125 {offsets = [2, 0, 0], sizes = [8, 16, 128], strides = [1, 1, 1]} : vector<10x16x128xbf16> to vector<8x16x128xbf16>
    %131 = vector.shape_cast %130 : vector<8x16x128xbf16> to vector<128x128xbf16>
    %132 = tpu.concatenate %127, %129 in 1 : vector<128x128xbf16>, vector<128x128xbf16> -> vector<128x256xbf16>
    %133 = tpu.concatenate %129, %131 in 1 : vector<128x128xbf16>, vector<128x128xbf16> -> vector<128x256xbf16>
    %c0_44 = arith.constant 0 : index
    %c0_45 = arith.constant 0 : index
    %c0_46 = arith.constant 0 : index
    %134 = vector.load %arg8[%c0_44, %c0_45, %c0_46] : memref<2x256x256xbf16, #tpu.memory_space<vmem>>, vector<1x256x256xbf16>
    %135 = vector.shape_cast %134 : vector<1x256x256xbf16> to vector<256x256xbf16>
    %cst_47 = arith.constant dense<0.000000e+00> : vector<128x256xf32>
    %136 = tpu.matmul %132, %135, %cst_47 {dimension_numbers = #tpu.dot_dimension_numbers<[1], [0], [0], [1], [0, 0, 1, 1], [], []>} : vector<128x256xbf16>, vector<256x256xbf16>, vector<128x256xf32> -> vector<128x256xf32>
    %cst_48 = arith.constant 0.000000e+00 : f32
    %137 = vector.broadcast %cst_48 : f32 to vector<128x256xf32>
    %138 = arith.maximumf %136, %137 : vector<128x256xf32>
    %c1_49 = arith.constant 1 : index
    %c0_50 = arith.constant 0 : index
    %c0_51 = arith.constant 0 : index
    %139 = vector.load %arg8[%c1_49, %c0_50, %c0_51] : memref<2x256x256xbf16, #tpu.memory_space<vmem>>, vector<1x256x256xbf16>
    %140 = vector.shape_cast %139 : vector<1x256x256xbf16> to vector<256x256xbf16>
    %cst_52 = arith.constant dense<0.000000e+00> : vector<128x256xf32>
    %141 = tpu.matmul %133, %140, %cst_52 {dimension_numbers = #tpu.dot_dimension_numbers<[1], [0], [0], [1], [0, 0, 1, 1], [], []>} : vector<128x256xbf16>, vector<256x256xbf16>, vector<128x256xf32> -> vector<128x256xf32>
    %cst_53 = arith.constant 0.000000e+00 : f32
    %142 = vector.broadcast %cst_53 : f32 to vector<128x256xf32>
    %143 = arith.maximumf %141, %142 : vector<128x256xf32>
    %c0_54 = arith.constant 0 : index
    %c0_55 = arith.constant 0 : index
    %c0_56 = arith.constant 0 : index
    %c0_57 = arith.constant 0 : index
    %144 = vector.load %arg9[%c0_54, %c0_55, %c0_56, %c0_57] : memref<1x2x128x256xf32, #tpu.memory_space<vmem>>, vector<1x1x128x256xf32>
    %145 = vector.shape_cast %144 : vector<1x1x128x256xf32> to vector<128x256xf32>
    %146 = vector.shape_cast %138 : vector<128x256xf32> to vector<1x1x128x256xf32>
    tpu.vector_store %arg9[%c0_54, %c0_55, %c0_56, %c0_57], %146 {strides = array<i32>} : memref<1x2x128x256xf32, #tpu.memory_space<vmem>>, vector<1x1x128x256xf32>,
    %c0_58 = arith.constant 0 : index
    %c1_59 = arith.constant 1 : index
    %c0_60 = arith.constant 0 : index
    %c0_61 = arith.constant 0 : index
    %147 = vector.load %arg9[%c0_58, %c1_59, %c0_60, %c0_61] : memref<1x2x128x256xf32, #tpu.memory_space<vmem>>, vector<1x1x128x256xf32>
    %148 = vector.shape_cast %147 : vector<1x1x128x256xf32> to vector<128x256xf32>
    %149 = vector.shape_cast %143 : vector<128x256xf32> to vector<1x1x128x256xf32>
    tpu.vector_store %arg9[%c0_58, %c1_59, %c0_60, %c0_61], %149 {strides = array<i32>} : memref<1x2x128x256xf32, #tpu.memory_space<vmem>>, vector<1x1x128x256xf32>,
    return
  }
  func.func @transform_0(%arg0: i32) -> (i32, i32, i32) {
    %c0_i32 = arith.constant 0 : i32
    %c0_i32_0 = arith.constant 0 : i32
    %c0_i32_1 = arith.constant 0 : i32
    return %arg0, %c0_i32, %c0_i32_0 : i32, i32, i32
  }
  func.func @transform_1(%arg0: i32) -> (i32, i32) {
    %c0_i32 = arith.constant 0 : i32
    %c0_i32_0 = arith.constant 0 : i32
    %c0_i32_1 = arith.constant 0 : i32
    return %c0_i32, %c0_i32_0 : i32, i32
  }
  func.func @transform_2(%arg0: i32) -> (i32, i32) {
    %c0_i32 = arith.constant 0 : i32
    %c0_i32_0 = arith.constant 0 : i32
    %c0_i32_1 = arith.constant 0 : i32
    return %c0_i32, %c0_i32_0 : i32, i32
  }
  func.func @transform_3(%arg0: i32) -> (i32, i32) {
    %c0_i32 = arith.constant 0 : i32
    %c0_i32_0 = arith.constant 0 : i32
    %c0_i32_1 = arith.constant 0 : i32
    return %c0_i32, %c0_i32_0 : i32, i32
  }
  func.func @transform_4(%arg0: i32) -> (i32, i32, i32) {
    %c0_i32 = arith.constant 0 : i32
    %c0_i32_0 = arith.constant 0 : i32
    %c0_i32_1 = arith.constant 0 : i32
    %c0_i32_2 = arith.constant 0 : i32
    return %c0_i32, %c0_i32_0, %c0_i32_1 : i32, i32, i32
  }
  func.func @transform_5(%arg0: i32) -> (i32, i32, i32) {
    %c0_i32 = arith.constant 0 : i32
    %c0_i32_0 = arith.constant 0 : i32
    %c0_i32_1 = arith.constant 0 : i32
    %c0_i32_2 = arith.constant 0 : i32
    return %c0_i32, %c0_i32_0, %c0_i32_1 : i32, i32, i32
  }
  func.func @transform_6(%arg0: i32) -> (i32, i32, i32) {
    %c0_i32 = arith.constant 0 : i32
    %c0_i32_0 = arith.constant 0 : i32
    %c0_i32_1 = arith.constant 0 : i32
    %c0_i32_2 = arith.constant 0 : i32
    return %c0_i32, %c0_i32_0, %c0_i32_1 : i32, i32, i32
  }
  func.func @transform_7(%arg0: i32) -> (i32, i32, i32) {
    %c0_i32 = arith.constant 0 : i32
    %c0_i32_0 = arith.constant 0 : i32
    %c0_i32_1 = arith.constant 0 : i32
    %c0_i32_2 = arith.constant 0 : i32
    return %c0_i32, %c0_i32_0, %c0_i32_1 : i32, i32, i32
  }
  func.func @transform_8(%arg0: i32) -> (i32, i32, i32, i32) {
    %c0_i32 = arith.constant 0 : i32
    %c0_i32_0 = arith.constant 0 : i32
    %c0_i32_1 = arith.constant 0 : i32
    %c0_i32_2 = arith.constant 0 : i32
    return %arg0, %c0_i32, %c0_i32_0, %c0_i32_1 : i32, i32, i32, i32
  }
}

</mosaic_0001>

<bundles_post_ra>
// kernel: decoder_forward.1
= control target key start
LH: loop header
LB: loop body
LE: loop exit
PB: predicated region body
PF: predicated region fallthrough
CT: control target
= control target key end

     0   :  { %s4271_s0 = inlined_call_operand.hbm [shape: f32[2,4,32], index: 0, kind: input, shape index: {}]   ;;  %s4272_s1 = inlined_call_operand.hbm [shape: bf16[32,64], index: 1, kind: input, shape index: {}]   ;;  %s4273_s2 = inlined_call_operand.hbm [shape: f32[1,64], index: 2, kind: input, shape index: {}]   ;;  %s4274_s3 = inlined_call_operand.hbm [shape: bf16[64,512], index: 3, kind: input, shape index: {}]   ;;  %s4275_s4 = inlined_call_operand.hbm [shape: bf16[2,256,128], index: 4, kind: input, shape index: {}]   ;;  %s4276_s5 = inlined_call_operand.hbm [shape: bf16[2,256,128], index: 5, kind: input, shape index: {}]   ;;  %s4277_s6 = inlined_call_operand.hbm [shape: bf16[2,256,128], index: 6, kind: input, shape index: {}]   ;;  %s4278_s7 = inlined_call_operand.hbm [shape: bf16[2,256,256], index: 7, kind: input, shape index: {}]   ;;  %s4279_s8 = inlined_call_operand.vmem [shape: f32[2,2,128,256], index: 8, kind: output, shape index: {}]  }
   0x1   :  { %4284 = sst [smem:[#allocation20_spill]] %s4272_s1 }
   0x2   :  { %13 = vsyncpa [#allocation3], 0 }
   0x3   :  { %15 = vsyncpa [#allocation3 + $0x1], 0 }
   0x4   :  { %16 = vsyncpa [#allocation5], 0 }
   0x5   :  { %17 = vsyncpa [#allocation8], 0 }
   0x6   :  { %18 = vsyncpa [#allocation11], 0 }
   0x7   :  { %19 = vsyncpa [#allocation14], 0  ;;  %s3859_s27 = smov 0   ;;  %s3861_s28 = smov 0  }
   0x8   :  { %s3863_s29 = smov 0   ;;  %s3865_s30 = smov 0  }
   0x9 LB: > { %s3797_s9 = smov [#allocation4]   ;;  %s3880_s11 = sadd.s32 4294967295, %s3795_s30   ;;  %s3795_s30 = sphi %s3865_s30, %s4307_s30   ;;  %s3791_s29 = sphi %s3863_s29, %s4306_s29   ;;  %s3787_s28 = sphi %s3861_s28, %s4305_s28   ;;  %s3783_s27 = sphi %s3859_s27, %s4304_s27  }
   0xa   : > { %s241_s10 = sshll.u32 %s3797_s9, 4  ;;  %p2740_p0 = scmp.ge.s32.totalorder %s3795_s30, 1  ;;  %s3885_s10 = int_to_ptr.vmem [resolvable:$true] %s241_s10 }
   0xb   : > { %p4282_p1 = scmp.eq.s32.totalorder %s3880_s11, 0  ;;  %p229_p2 = scmp.lt.s32.totalorder %s3795_s30, 3 }
   0xc   : > { %s3798_s13 = smov [#allocation7]   ;;  %s3799_s16 = smov [#allocation10]  }
   0xd   : > { %p3887_p3 = pnand %p2740_p0, %p229_p2  ;;  %s265_s14 = sshll.u32 %s3798_s13, 4  ;;  %s3899_s14 = int_to_ptr.vmem [resolvable:$true] %s265_s14 }
   0xe   : > { %s3901_s17 = sshll.u32 %s3799_s16, 4  ;;  %s4287_s1 = sld [smem:[#allocation20_spill]]  ;;  %s292_s17 = int_to_ptr.vmem [resolvable:$true] %s3901_s17 }
   0xf   : > { %s4285_s12 = scalar_select %p3887_p3, 1, 0 }
  0x10   : > { %p3212_p4 = pneg %p3887_p3 }
  0x12   : > { %p3895_p5 = pnand %p3212_p4, %p4282_p1 }
  0x14   : > { %s3519_s20 = scalar_lea.hbm %s4287_s1, 256  ;;  %p3911_p7 = pneg %p3895_p5 }
  0x15   : > { %p3520_p6 = scmp.ne.s32.totalorder %s4287_s1, %s3519_s20  ;;  %p3526_p10 = scmp.lt.u32.totalorder %s3519_s20, %s4287_s1 }
  0x17   : > { %p3522_p8 = pnand %p3911_p7, %p3520_p6 }
  0x19   : > { %p3523_p9 = pneg %p3522_p8 }
  0x1b   : > { %p3528_p11 = pnand %p3526_p10, %p3523_p9 }
  0x1d   : > { %3531 = shalt.err (!%p3528_p11)
}
  0x1e   : > { %s3532_s26 = scalar_lea.vmem %s3885_s10, 256  ;;  %p3540_p2 = scmp.lt.s32.totalorder %s3885_s10, %s3885_s10 }
  0x1f   : > { %p3533_p12 = scmp.ne.s32.totalorder %s3885_s10, %s3532_s26  ;;  %p3541_p4 = scmp.lt.s32.totalorder %s3532_s26, %s3532_s26 }
  0x21   : > { %p3535_p13 = pnand %p3533_p12, %p3911_p7  ;;  %p3542_p6 = por %p3541_p4, %p3540_p2 }
  0x23   : > { %p3536_p0 = pneg %p3535_p13 }
  0x25   : > { %p3543_p8 = pnand %p3542_p6, %p3536_p0 }
  0x27   : > { %3546 = shalt.err (!%p3543_p8)
}
  0x28   : > { %s4280_s9 = smov 64   ;;  %s3801_s13 = smov 4  }
  0x29   : > { %3215 = dma.hbm_to_vmem [thread:$0]  (!%p3895_p5), %s4287_s1, 256, %s3885_s10, [#allocation5], %s4280_s9, %s4280_s9, %s3801_s13  }
  0x2a   : > { %s3547_s21 = scalar_lea.hbm %s4274_s3, 2048 }
  0x2b   : > { %p3548_p9 = scmp.ne.s32.totalorder %s4274_s3, %s3547_s21  ;;  %p3554_p12 = scmp.lt.u32.totalorder %s3547_s21, %s4274_s3 }
  0x2d   : > { %p3550_p10 = pnand %p3548_p9, %p3911_p7 }
  0x2f   : > { %p3551_p11 = pneg %p3550_p10 }
  0x31   : > { %p3556_p13 = pnand %p3554_p12, %p3551_p11 }
  0x33   : > { %3559 = shalt.err (!%p3556_p13)
}
  0x34   : > { %s3560_s10 = scalar_lea.vmem %s3899_s14, 2048  ;;  %p3568_p6 = scmp.lt.s32.totalorder %s3899_s14, %s3899_s14 }
  0x35   : > { %p3561_p0 = scmp.ne.s32.totalorder %s3899_s14, %s3560_s10  ;;  %p3569_p8 = scmp.lt.s32.totalorder %s3560_s10, %s3560_s10 }
  0x37   : > { %p3563_p2 = pnand %p3561_p0, %p3911_p7  ;;  %p3570_p9 = por %p3569_p8, %p3568_p6 }
  0x39   : > { %p3564_p4 = pneg %p3563_p2 }
  0x3b   : > { %p3571_p10 = pnand %p3570_p9, %p3564_p4 }
  0x3d   : > { %3574 = shalt.err (!%p3571_p10)
}
  0x3e   : > { %s3802_s16 = smov 256   ;;  %s3803_s18 = smov 16  }
  0x3f   : > { %3221 = dma.hbm_to_vmem [thread:$0]  (!%p3895_p5), %s4274_s3, 2048, %s3899_s14, [#allocation8], %s3802_s16, %s3802_s16, %s3803_s18  }
  0x40   : > { %s3575_s24 = scalar_lea.hbm %s4276_s5, 4096 }
  0x41   : > { %p3576_p11 = scmp.ne.s32.totalorder %s4276_s5, %s3575_s24  ;;  %p3582_p0 = scmp.lt.u32.totalorder %s3575_s24, %s4276_s5 }
  0x43   : > { %p3578_p12 = pnand %p3576_p11, %p3911_p7 }
  0x45   : > { %p3579_p13 = pneg %p3578_p12 }
  0x47   : > { %p3584_p2 = pnand %p3582_p0, %p3579_p13 }
  0x49   : > { %3587 = shalt.err (!%p3584_p2)
}
  0x4a   : > { %s3588_s19 = scalar_lea.vmem %s292_s17, 4096  ;;  %p3596_p9 = scmp.lt.s32.totalorder %s292_s17, %s292_s17 }
  0x4b   : > { %p3589_p4 = scmp.ne.s32.totalorder %s292_s17, %s3588_s19  ;;  %p3597_p10 = scmp.lt.s32.totalorder %s3588_s19, %s3588_s19 }
  0x4d   : > { %p3591_p6 = pnand %p3589_p4, %p3911_p7  ;;  %p3598_p1 = por %p3597_p10, %p3596_p9 }
  0x4f   : > { %p3592_p8 = pneg %p3591_p6 }
  0x51   : > { %p3599_p3 = pnand %p3598_p1, %p3592_p8 }
  0x53   : > { %3602 = shalt.err (!%p3599_p3)
}
  0x54   : > { %s4289_s14 = smov 64   ;;  %s3804_s18 = smov [#allocation6]  }
  0x55   : > { %3227 = dma.hbm_to_vmem [thread:$0]  (!%p3895_p5), %s4276_s5, 4096, %s292_s17, [#allocation11], %s4289_s14, %s4289_s14, %s3801_s13  }
  0x56   : > { %s255_s20 = sshll.u32 %s3804_s18, 4  ;;  %s3805_s21 = smov [#allocation9]   ;;  %s256_s20 = int_to_ptr.vmem [resolvable:$true] %s255_s20 }
  0x57   : > { %s278_s22 = sshll.u32 %s3805_s21, 4  ;;  %s3603_s26 = scalar_lea.hbm %s4273_s2, 16  ;;  %s279_s22 = int_to_ptr.vmem [resolvable:$true] %s278_s22 }
  0x58   : > { %p3604_p1 = scmp.ne.s32.totalorder %s4273_s2, %s3603_s26  ;;  %p3610_p12 = scmp.lt.u32.totalorder %s3603_s26, %s4273_s2 }
  0x5a   : > { %p3606_p3 = pnand %p3604_p1, %p3911_p7 }
  0x5c   : > { %p3607_p11 = pneg %p3606_p3 }
  0x5e   : > { %p3612_p13 = pnand %p3610_p12, %p3607_p11 }
  0x60   : > { %3615 = shalt.err (!%p3612_p13)
}
  0x61   : > { %s3616_s17 = scalar_lea.vmem %s256_s20, 16  ;;  %s3623_s16 = scalar_lea.vmem %s256_s20, 32 }
  0x62   : > { %p3617_p0 = scmp.ne.s32.totalorder %s256_s20, %s3616_s17  ;;  %p3624_p6 = scmp.lt.s32.totalorder %s256_s20, %s256_s20 }
  0x63   : > { %p3625_p8 = scmp.lt.s32.totalorder %s3623_s16, %s3616_s17 }
  0x64   : > { %p3619_p2 = pnand %p3617_p0, %p3911_p7 }
  0x65   : > { %p3626_p9 = por %p3625_p8, %p3624_p6 }
  0x66   : > { %p3620_p4 = pneg %p3619_p2 }
  0x68   : > { %p3627_p10 = pnand %p3626_p9, %p3620_p4 }
  0x6a   : > { %3630 = shalt.err (!%p3627_p10)
}
  0x6b   : > { %3218 = dma.hbm_to_vmem [thread:$0]  (!%p3895_p5), %s4273_s2, 16, %s256_s20, [#allocation5]  }
  0x6c   : > { %s3631_s25 = scalar_lea.hbm %s4275_s4, 4096 }
  0x6d   : > { %p3632_p1 = scmp.ne.s32.totalorder %s4275_s4, %s3631_s25  ;;  %p3638_p12 = scmp.lt.u32.totalorder %s3631_s25, %s4275_s4 }
  0x6f   : > { %p3634_p3 = pnand %p3632_p1, %p3911_p7 }
  0x71   : > { %p3635_p11 = pneg %p3634_p3 }
  0x73   : > { %p3640_p13 = pnand %p3638_p12, %p3635_p11 }
  0x75   : > { %3643 = shalt.err (!%p3640_p13)
}
  0x76   : > { %s3644_s17 = scalar_lea.vmem %s279_s22, 4096  ;;  %p3652_p6 = scmp.lt.s32.totalorder %s279_s22, %s279_s22 }
  0x77   : > { %p3645_p0 = scmp.ne.s32.totalorder %s279_s22, %s3644_s17  ;;  %p3653_p8 = scmp.lt.s32.totalorder %s3644_s17, %s3644_s17 }
  0x79   : > { %p3647_p2 = pnand %p3645_p0, %p3911_p7  ;;  %p3654_p9 = por %p3653_p8, %p3652_p6 }
  0x7b   : > { %p3648_p4 = pneg %p3647_p2 }
  0x7d   : > { %p3655_p10 = pnand %p3654_p9, %p3648_p4 }
  0x7f   : > { %3658 = shalt.err (!%p3655_p10)
}
  0x80   : > { %3224 = dma.hbm_to_vmem [thread:$0]  (!%p3895_p5), %s4275_s4, 4096, %s279_s22, [#allocation8], %s4289_s14, %s4289_s14, %s3801_s13  }
  0x81   : > { %s3806_s18 = smov [#allocation12]   ;;  %s3807_s1 = smov [#allocation13]  }
  0x82   : > { %s304_s21 = sshll.u32 %s3806_s18, 4  ;;  %s317_s24 = sshll.u32 %s3807_s1, 4  ;;  %s305_s21 = int_to_ptr.vmem [resolvable:$true] %s304_s21  ;;  %s318_s24 = int_to_ptr.vmem [resolvable:$true] %s317_s24 }
  0x83   : > { %s3659_s10 = scalar_lea.hbm %s4277_s6, 4096 }
  0x84   : > { %p3660_p1 = scmp.ne.s32.totalorder %s4277_s6, %s3659_s10  ;;  %p3666_p12 = scmp.lt.u32.totalorder %s3659_s10, %s4277_s6 }
  0x86   : > { %p3662_p3 = pnand %p3660_p1, %p3911_p7 }
  0x88   : > { %p3663_p11 = pneg %p3662_p3 }
  0x8a   : > { %p3668_p13 = pnand %p3666_p12, %p3663_p11 }
  0x8c   : > { %3671 = shalt.err (!%p3668_p13)
}
  0x8d   : > { %s3672_s22 = scalar_lea.vmem %s305_s21, 4096  ;;  %p3680_p6 = scmp.lt.s32.totalorder %s305_s21, %s305_s21 }
  0x8e   : > { %p3673_p0 = scmp.ne.s32.totalorder %s305_s21, %s3672_s22  ;;  %p3681_p8 = scmp.lt.s32.totalorder %s3672_s22, %s3672_s22 }
  0x90   : > { %p3675_p2 = pnand %p3673_p0, %p3911_p7  ;;  %p3682_p9 = por %p3681_p8, %p3680_p6 }
  0x92   : > { %p3676_p4 = pneg %p3675_p2 }
  0x94   : > { %p3683_p10 = pnand %p3682_p9, %p3676_p4 }
  0x96   : > { %3686 = shalt.err (!%p3683_p10)
}
  0x97   : > { %3230 = dma.hbm_to_vmem [thread:$0]  (!%p3895_p5), %s4277_s6, 4096, %s305_s21, [#allocation11], %s4289_s14, %s4289_s14, %s3801_s13  }
  0x98   : > { %s3687_s26 = scalar_lea.hbm %s4278_s7, 8192 }
  0x99   : > { %p3688_p1 = scmp.ne.s32.totalorder %s4278_s7, %s3687_s26  ;;  %p3694_p12 = scmp.lt.u32.totalorder %s3687_s26, %s4278_s7 }
  0x9b   : > { %p3690_p3 = pnand %p3688_p1, %p3911_p7 }
  0x9d   : > { %p3691_p11 = pneg %p3690_p3 }
  0x9f   : > { %p3696_p13 = pnand %p3694_p12, %p3691_p11 }
  0xa1   : > { %3699 = shalt.err (!%p3696_p13)
}
  0xa2   : > { %s3700_s20 = scalar_lea.vmem %s318_s24, 8192  ;;  %p3708_p6 = scmp.lt.s32.totalorder %s318_s24, %s318_s24 }
  0xa3   : > { %p3701_p0 = scmp.ne.s32.totalorder %s318_s24, %s3700_s20  ;;  %p3709_p8 = scmp.lt.s32.totalorder %s3700_s20, %s3700_s20 }
  0xa5   : > { %p3703_p2 = pnand %p3701_p0, %p3911_p7  ;;  %p3710_p9 = por %p3709_p8, %p3708_p6 }
  0xa7   : > { %p3704_p4 = pneg %p3703_p2 }
  0xa9   : > { %p3711_p10 = pnand %p3710_p9, %p3704_p4 }
  0xab   : > { %3714 = shalt.err (!%p3711_p10)
}
  0xac   : > { %s3808_s13 = smov 128   ;;  %s3809_s23 = smov 8  }
  0xad   : > { %3233 = dma.hbm_to_vmem [thread:$0]  (!%p3895_p5), %s4278_s7, 8192, %s318_s24, [#allocation14], %s3808_s13, %s3808_s13, %s3809_s23  }
  0xae   : > { %s4059_s22 = sadd.s32 1, %s3795_s30   ;;  %s32_s18 = sadd.s32 1, %s3791_s29 }
  0xaf   : > { %s29_s16 = ssub.s32 %s3795_s30, %s4059_s22  ;;  %p39_p1 = scmp.ne.s32.totalorder %s3791_s29, %s3787_s28 }
  0xb0   : > { %p30_p7 = scmp.eq.s32.totalorder %s29_s16, 0  ;;  %p40_p3 = scmp.eq.s32.totalorder %s3795_s30, 0 }
  0xb1   : > { %p45_p11 = scmp.ne.s32.totalorder %s3787_s28, %s3783_s27  ;;  %p4290_p13 = scmp.eq.s32.totalorder %s3880_s11, 0 }
  0xb2   : > { %s4070_s1 = scalar_select %p30_p7, %s3791_s29, %s32_s18  }
  0xb3   : > { %p41_p12 = por %p40_p3, %p39_p1  ;;  %p4074_p0 = por %p4290_p13, %p45_p11 }
  0xb4   : > { %p3245_p2 = scmp.lt.s32.totalorder %s3795_s30, 2  ;;  %s331_s15 = sand.u32 1, %s3791_s29  }
  0xb5   : > { %s2749_s24 = sshll.u32 %s331_s15, 2  ;;  %s2750_s26 = sshll.u32 %s3795_s30, 6 }
  0xb6   : > { %s4084_s9 = scalar_lea.hbm %s4271_s0, %s2750_s26  ;;  %s335_s27 = scalar_lea.vmem [#allocation2], %s2749_s24 }
  0xb7   : > { %s342_s17 = sshll.u32 %s335_s27, 4  ;;  %p4088_p5 = pnand %p3245_p2, %p41_p12  ;;  %s4086_s17 = int_to_ptr.vmem [resolvable:$true] %s342_s17 }
  0xb8   : > { %s332_s30 = scalar_lea.sflag [#allocation3], %s331_s15  ;;  %s3715_s13 = scalar_lea.hbm %s4084_s9, 64 }
  0xb9   : > { %p3716_p4 = scmp.ne.s32.totalorder %s4084_s9, %s3715_s13  ;;  %p3717_p6 = pneg %p4088_p5 }
  0xba   : > { %s3720_s21 = scalar_lea.hbm %s4271_s0, 128  ;;  %p3721_p10 = scmp.lt.u32.totalorder %s4084_s9, %s4271_s0 }
  0xbb   : > { %p3718_p8 = pnand %p3717_p6, %p3716_p4  ;;  %p3722_p7 = scmp.lt.u32.totalorder %s3720_s21, %s3715_s13 }
  0xbc   : > { %p3724_p3 = scmp.lt.u32.totalorder %s3715_s13, %s4084_s9 }
  0xbd   : > { %p3719_p9 = pneg %p3718_p8  ;;  %p3723_p1 = por %p3722_p7, %p3721_p10 }
  0xbf   : > { %p3725_p11 = por %p3724_p3, %p3723_p1 }
  0xc1   : > { %p3726_p12 = pnand %p3725_p11, %p3719_p9 }
  0xc3   : > { %3729 = shalt.err (!%p3726_p12)
}
  0xc4   : > { %s3730_s15 = scalar_lea.vmem %s4086_s17, 64  ;;  %s3810_s24 = smov [#allocation2]  }
  0xc5   : > { %p3731_p13 = scmp.ne.s32.totalorder %s4086_s17, %s3730_s15  ;;  %s3735_s26 = sshll.u32 %s3810_s24, 4  ;;  %s3736_s26 = int_to_ptr.vmem [resolvable:$false] %s3735_s26 }
  0xc6   : > { %s3737_s10 = scalar_lea.vmem %s3736_s26, 128  ;;  %p3738_p8 = scmp.lt.s32.totalorder %s4086_s17, %s3736_s26 }
  0xc7   : > { %p3733_p2 = pnand %p3731_p13, %p3717_p6  ;;  %p3739_p10 = scmp.lt.s32.totalorder %s3737_s10, %s3730_s15 }
  0xc9   : > { %p3734_p4 = pneg %p3733_p2  ;;  %p3740_p7 = por %p3739_p10, %p3738_p8 }
  0xcb   : > { %p3741_p1 = pnand %p3740_p7, %p3734_p4 }
  0xcd   : > { %3744 = shalt.err (!%p3741_p1)
}
  0xce   : > { %3237 = dma.hbm_to_vmem [thread:$0]  (!%p4088_p5), %s4084_s9, 64, %s4086_s17, %s332_s30  }
  0xcf   : > { %p4293_p9 = scmp.ne.s32.totalorder %s4285_s12, 0 }
  0xd0   : > { %s353_s19 = sand.u32 (!%p4293_p9), 1, %s3787_s28  }
  0xd1   : > { %351 = sbr.rel (%p4293_p9) target bundleno = 1648 (0x670), region = 52  ;;  %s2752_s27 = sshll.u32 (!%p4293_p9), %s353_s19, 2 }
  0xd2   : > { %s354_s13 = scalar_lea.sflag (!%p4293_p9), [#allocation3], %s353_s19  ;;  %s357_s23 = scalar_lea.vmem (!%p4293_p9), [#allocation2], %s2752_s27 }
  0xd8   : > { %3762 = dma.done.wait (%p4074_p0), %s354_s13, 64  }
  0xd9   : > { %3764 = vsyncadd (%p4074_p0), %s354_s13, 4294967232  ;;  %p4294_p6 = scmp.eq.s32.totalorder %s3880_s11, 0 }
  0xdb   : > { %3766 = dma.done.wait (%p4294_p6), [#allocation5], 272   ;;  %p4295_p3 = pmov %p4294_p6 }
  0xdd   : > { %3768 = vsyncadd (%p4295_p3), [#allocation5], 4294967024  ;;  %p4296_p5 = pmov %p4295_p3 }
  0xde   : > { %p4297_p11 = pmov %p4295_p3 }
  0xdf   : > { %3770 = dma.done.wait (%p4296_p5), [#allocation8], 6144  }
  0xe0   : > { %3772 = vsyncadd (%p4297_p11), [#allocation8], 4294961152  ;;  %p4298_p12 = pmov %p4295_p3 }
  0xe1   : > { %p4299_p13 = pmov %p4295_p3 }
  0xe2   : > { %3774 = dma.done.wait (%p4298_p12), [#allocation11], 8192  }
  0xe3   : > { %3776 = vsyncadd (%p4299_p13), [#allocation11], 4294959104  ;;  %p4300_p0 = pmov %p4295_p3 }
  0xe5   : > { %3778 = dma.done.wait (%p4300_p0), [#allocation14], 8192   ;;  %p4301_p2 = pmov %p4300_p0 }
  0xe6   : > { %v3811_v0 = vmov 0.0   ;;  %vm3812_vm0 = vmmov 0   ;;  %v3301_v1 = vld [vmem:[#allocation4] sm:$0xff]   ;;  %v3302_v2 = vld [vmem:[#allocation4 + $0x8] sm:$0xff]   ;;  %v424_v3 = vld [vmem:[%s357_s23] sm:$0xf] }
  0xe7   : > { %3780 = vsyncadd (%p4301_p2), [#allocation14], 4294959104  ;;  %3174 = vmatprep.subr.bf16.mxu0 %v3811_v0  ;;  %3178 = vmatprep.mubr.msk.bf16.mxu0 %vm3812_vm0, %v3811_v0  ;;  %v3303_v4 = vld [vmem:[#allocation7 + $0x4] ss:$16 sps:$4 sm:$0xff]   ;;  %v3307_v5 = vld [vmem:[#allocation7 + $0xc] ss:$16 sps:$4 sm:$0xff]   ;;  %v425_v7 = vpack.c.bf16 %v424_v3, %v424_v3 }
  0xe8   : > { %3175 = vmatpush3.bf16.msra.mxu0 %v3301_v1  ;;  %v3308_v6 = vld [vmem:[#allocation7] ss:$16 sps:$4 sm:$0xff]   ;;  %595 = vmatprep.subr.bf16.mxu1 %v3303_v4  ;;  %v3309_v8 = vld [vmem:[#allocation7 + $0x24] ss:$16 sps:$4 sm:$0xff]   ;;  %vm449_vm1 = vcmask 261120   ;;  %v3813_v21 = vmov 0  }
  0xe9   : > { %3176 = vmatprep.subr.bf16.mxu0 %v3811_v0  ;;  %v3305_v9 = vld [vmem:[#allocation7 + $0x8] ss:$16 sps:$4 sm:$0xff]   ;;  %596 = vmatpush1.bf16.msra.mxu1 %v3308_v6  ;;  %v3313_v10 = vld [vmem:[#allocation7 + $0x2c] ss:$16 sps:$4 sm:$0xff]   ;;  %v3314_v11 = vld [vmem:[#allocation7 + $0x20] ss:$16 sps:$4 sm:$0xff]  }
  0xea   : > { %597 = vmatprep.subr.bf16.mxu1 %v3309_v8  ;;  %v3315_v12 = vld [vmem:[#allocation7 + $0x44] ss:$16 sps:$4 sm:$0xff]   ;;  %v3311_v13 = vld [vmem:[#allocation7 + $0x28] ss:$16 sps:$4 sm:$0xff]   ;;  %v3319_v14 = vld [vmem:[#allocation7 + $0x4c] ss:$16 sps:$4 sm:$0xff]   ;;  %627 = vmatprep.mubr.bf16.mxu1 %v3813_v21 }
  0xeb   : > { %v3317_v15 = vld [vmem:[#allocation7 + $0x48] ss:$16 sps:$4 sm:$0xff]   ;;  %v3320_v16 = vld [vmem:[#allocation7 + $0x40] ss:$16 sps:$4 sm:$0xff]   ;;  %v3321_v17 = vld [vmem:[#allocation7 + $0x64] ss:$16 sps:$4 sm:$0xff]  }
  0xec   : > { %3177 = vmatpush3.bf16.msra.mxu0 %v3302_v2  ;;  %v3325_v18 = vld [vmem:[#allocation7 + $0x6c] ss:$16 sps:$4 sm:$0xff]   ;;  %v3323_v19 = vld [vmem:[#allocation7 + $0x68] ss:$16 sps:$4 sm:$0xff]   ;;  %v3326_v20 = vld [vmem:[#allocation7 + $0x60] ss:$16 sps:$4 sm:$0xff]  }
  0xed   : > { %636 = vmatprep.subr.bf16.mxu0 %v3307_v5  ;;  %598 = vmatpush1.bf16.msra.mxu1 %v3314_v11  ;;  %v3327_v22 = vld [vmem:[#allocation9 + $0x40] sm:$0xff]   ;;  %v2762_v24 = vld [vmem:[#allocation6] ss:$0 sm:$0xff]  ;;  %vm591_vm2 = vcmask 523264   ;;  %v3331_v34 = vld [vmem:[#allocation9 + $0x48] sm:$0xff]   ;;  %vm691_vm3 = vcmask 1041408  }
  0xee   : > { %599 = vmatprep.subr.bf16.mxu1 %v3315_v12  ;;  %v3329_v23 = vld [vmem:[#allocation9 + $0xc0] sm:$0xff]   ;;  %v3333_v35 = vld [vmem:[#allocation9 + $0xc8] sm:$0xff]   ;;  %v3335_v38 = vld [vmem:[#allocation9 + $0x50] sm:$0xff]   ;;  %vm695_vm4 = vcmask 1043456   ;;  %vm698_vm5 = vcmask 1045504   ;;  %p418_p4 = scmp.lt.s32.totalorder %s3880_s11, 1 }
  0xef   : > { %3179 = vmatmul.mubr.msk.bf16.vlgmr.msra.gmra.mrb[0].mxu0 %vm449_vm1, %v425_v7  ;;  %v3328_v31 = vld [vmem:[#allocation9] sm:$0xff]   ;;  %v3332_v36 = vld [vmem:[#allocation9 + $0x8] sm:$0xff]   ;;  %v3337_v39 = vld [vmem:[#allocation9 + $0xd0] sm:$0xff]  }
  0xf0   : > { %637 = vmatpush1.bf16.msra.mxu0 %v3305_v9  ;;  %668 = vmatprep.mubr.bf16.mxu0 %v3813_v21  ;;  %v3330_v32 = vld [vmem:[#allocation9 + $0x80] sm:$0xff]   ;;  %v3334_v37 = vld [vmem:[#allocation9 + $0x88] sm:$0xff]   ;;  %v3336_v40 = vld [vmem:[#allocation9 + $0x10] sm:$0xff]   ;;  %s4309_s11 = smov (!%p418_p4, %s3880_s11), 1 }
  0xf1   : > { %638 = vmatprep.subr.bf16.mxu0 %v3313_v10  ;;  %600 = vmatpush1.bf16.msra.mxu1 %v3320_v16  ;;  %v3338_v41 = vld [vmem:[#allocation9 + $0x90] sm:$0xff]   ;;  %v3339_v42 = vld [vmem:[#allocation9 + $0x58] sm:$0xff]   ;;  %v3343_v46 = vld [vmem:[#allocation9 + $0x60] sm:$0xff]   ;;  %s2990_s12 = sshll.u32 %s4309_s11, 9 }
  0xf2   : > { %601 = vmatprep.subr.bf16.mxu1 %v3321_v17  ;;  %v3341_v43 = vld [vmem:[#allocation9 + $0xd8] sm:$0xff]   ;;  %v3345_v47 = vld [vmem:[#allocation9 + $0xe0] sm:$0xff]   ;;  %v3347_v50 = vld [vmem:[#allocation9 + $0x68] sm:$0xff]   ;;  %s4192_s17 = scalar_lea.vmem %s4279_s8, %s2990_s12 }
  0xf3   : > { %v3340_v44 = vld [vmem:[#allocation9 + $0x18] sm:$0xff]   ;;  %v3344_v48 = vld [vmem:[#allocation9 + $0x20] sm:$0xff]   ;;  %v3348_v51 = vld [vmem:[#allocation9 + $0x28] sm:$0xff]  }
  0xf4   : > { %639 = vmatpush1.bf16.msra.mxu0 %v3311_v13  ;;  %v3342_v45 = vld [vmem:[#allocation9 + $0x98] sm:$0xff]   ;;  %v3346_v49 = vld [vmem:[#allocation9 + $0xa0] sm:$0xff]   ;;  %v3349_v52 = vld [vmem:[#allocation9 + $0xe8] sm:$0xff]  }
  0xf5   : > { %640 = vmatprep.subr.bf16.mxu0 %v3319_v14  ;;  %602 = vmatpush1.bf16.msra.mxu1 %v3326_v20  ;;  %v3350_v53 = vld [vmem:[#allocation9 + $0xa8] sm:$0xff]   ;;  %v3351_v54 = vld [vmem:[#allocation9 + $0x70] sm:$0xff]   ;;  %v3355_v58 = vld [vmem:[#allocation9 + $0x78] sm:$0xff]  }
  0xf6   : > { %2994 = vmatprep.subr.bf16.mxu1 %v3327_v22  ;;  %v3352_v55 = vld [vmem:[#allocation9 + $0x30] sm:$0xff]   ;;  %v3356_v59 = vld [vmem:[#allocation9 + $0x38] sm:$0xff]   ;;  %v3359_v62 = vld [vmem:[#allocation10 + $0xc0] sm:$0xff]  }
  0xf7   : > { %v3353_v56 = vld [vmem:[#allocation9 + $0xf0] sm:$0xff]   ;;  %v3357_v60 = vld [vmem:[#allocation9 + $0xf8] sm:$0xff]   ;;  %v3360_v63 = vld [vmem:[#allocation10 + $0x40] sm:$0xff]  }
  0xf8   : > { %641 = vmatpush1.bf16.msra.mxu0 %v3317_v15  ;;  %v3354_v57 = vld [vmem:[#allocation9 + $0xb0] sm:$0xff]   ;;  %v3358_v61 = vld [vmem:[#allocation9 + $0xb8] sm:$0xff]   ;;  %vm4141_vm6 = vmneg %vm691_vm3 }
  0xf9   : > { %642 = vmatprep.subr.bf16.mxu0 %v3325_v18 }
  0xfc   : > { %643 = vmatpush1.bf16.msra.mxu0 %v3323_v19 }
  0xfd   : > { %3016 = vmatprep.subr.bf16.mxu0 %v3329_v23  ;;  %v3362_v23 = vld [vmem:[#allocation10] sm:$0xff]  }
 0x1c2   : > { %v487_v25 = vpop.f32.mrb[0].mxu0 }
 0x1c3   : > { %v488_v26 = vadd.f32 %v2762_v24, %v487_v25  ;;  %v3180_v27 = vpop.f32.mrb[1].mxu0 }
 0x1c4   : > { %v490_v28 = vpop.f32.mrb[2].mxu0  ;;  %v3364_v27 = vld [vmem:[#allocation10 + $0x48] sm:$0xff]  }
 0x1c5   : > { %v493_v29 = vmax.f32 %v488_v26, 0.0  ;;  %v3181_v30 = vpop.f32.mrb[3].mxu0  ;;  %v3361_v26 = vld [vmem:[#allocation10 + $0x80] sm:$0xff]   ;;  %v3363_v28 = vld [vmem:[#allocation10 + $0xc8] sm:$0xff]  }
 0x1c6   : > { %v3365_v30 = vld [vmem:[#allocation10 + $0x88] sm:$0xff]  }
 0x1c7   : > { %v494_v33 = vpack.c.bf16 %v493_v29, %v493_v29  ;;  %v3366_v29 = vld [vmem:[#allocation10 + $0x8] sm:$0xff]  }
 0x1c9   : > { %2782 = vmatmul.mubr.msk.bf16.vlgmr.msra.gmra.mrb[0].mxu1 %vm591_vm2, %v494_v33  ;;  %2783 = vmatmul.mubr.msk.bf16.vlgmr.msra.gmra.mrb[4].mxu0 %vm591_vm2, %v494_v33  ;;  %v3370_v33 = vld [vmem:[#allocation10 + $0x10] sm:$0xff]  }
 0x1ca   : > { %2995 = vmatpush3.bf16.msra.mxu1 %v3328_v31  ;;  %3017 = vmatpush3.bf16.msra.mxu0 %v3330_v32  ;;  %v3368_v31 = vld [vmem:[#allocation10 + $0x50] sm:$0xff]  }
 0x1cb   : > { %2996 = vmatprep.subr.bf16.mxu1 %v3331_v34  ;;  %3018 = vmatprep.subr.bf16.mxu0 %v3333_v35  ;;  %v3367_v32 = vld [vmem:[#allocation10 + $0xd0] sm:$0xff]   ;;  %v3372_v35 = vld [vmem:[#allocation10 + $0x58] sm:$0xff]  }
 0x1cc   : > { %v3369_v34 = vld [vmem:[#allocation10 + $0x90] sm:$0xff]  }
 0x1ce   : > { %2997 = vmatpush3.bf16.msra.mxu1 %v3332_v36  ;;  %3019 = vmatpush3.bf16.msra.mxu0 %v3334_v37  ;;  %v3371_v36 = vld [vmem:[#allocation10 + $0xd8] sm:$0xff]  }
 0x1cf   : > { %2998 = vmatprep.subr.bf16.mxu1 %v3335_v38  ;;  %3020 = vmatprep.subr.bf16.mxu0 %v3337_v39  ;;  %v3374_v37 = vld [vmem:[#allocation10 + $0x18] sm:$0xff]   ;;  %v3376_v39 = vld [vmem:[#allocation10 + $0x60] sm:$0xff]  }
 0x1d0   : > { %v3373_v38 = vld [vmem:[#allocation10 + $0x98] sm:$0xff]  }
 0x1d2   : > { %2999 = vmatpush3.bf16.msra.mxu1 %v3336_v40  ;;  %3021 = vmatpush3.bf16.msra.mxu0 %v3338_v41  ;;  %v3375_v40 = vld [vmem:[#allocation10 + $0xe0] sm:$0xff]  }
 0x1d3   : > { %3000 = vmatprep.subr.bf16.mxu1 %v3339_v42  ;;  %3022 = vmatprep.subr.bf16.mxu0 %v3341_v43  ;;  %v3378_v41 = vld [vmem:[#allocation10 + $0x20] sm:$0xff]   ;;  %v3379_v43 = vld [vmem:[#allocation10 + $0xe8] sm:$0xff]  }
 0x1d4   : > { %v3377_v42 = vld [vmem:[#allocation10 + $0xa0] sm:$0xff]  }
 0x1d6   : > { %3001 = vmatpush3.bf16.msra.mxu1 %v3340_v44  ;;  %3023 = vmatpush3.bf16.msra.mxu0 %v3342_v45  ;;  %v3380_v44 = vld [vmem:[#allocation10 + $0x68] sm:$0xff]  }
 0x1d7   : > { %3002 = vmatprep.subr.bf16.mxu1 %v3343_v46  ;;  %3024 = vmatprep.subr.bf16.mxu0 %v3345_v47  ;;  %v3381_v45 = vld [vmem:[#allocation10 + $0xa8] sm:$0xff]   ;;  %v3383_v47 = vld [vmem:[#allocation10 + $0xf0] sm:$0xff]  }
 0x1d8   : > { %v3382_v46 = vld [vmem:[#allocation10 + $0x28] sm:$0xff]  }
 0x1da   : > { %3003 = vmatpush3.bf16.msra.mxu1 %v3344_v48  ;;  %3025 = vmatpush3.bf16.msra.mxu0 %v3346_v49  ;;  %v3384_v48 = vld [vmem:[#allocation10 + $0x70] sm:$0xff]  }
 0x1db   : > { %3004 = vmatprep.subr.bf16.mxu1 %v3347_v50  ;;  %3026 = vmatprep.subr.bf16.mxu0 %v3349_v52  ;;  %v3385_v49 = vld [vmem:[#allocation10 + $0xb0] sm:$0xff]   ;;  %v3388_v52 = vld [vmem:[#allocation10 + $0x78] sm:$0xff]  }
 0x1dc   : > { %v3386_v50 = vld [vmem:[#allocation10 + $0x30] sm:$0xff]  }
 0x1de   : > { %3005 = vmatpush3.bf16.msra.mxu1 %v3348_v51  ;;  %3027 = vmatpush3.bf16.msra.mxu0 %v3350_v53  ;;  %v3387_v51 = vld [vmem:[#allocation10 + $0xf8] sm:$0xff]  }
 0x1df   : > { %3006 = vmatprep.subr.bf16.mxu1 %v3351_v54  ;;  %3028 = vmatprep.subr.bf16.mxu0 %v3353_v56  ;;  %v3389_v53 = vld [vmem:[#allocation10 + $0xb8] sm:$0xff]   ;;  %v3396_v56 = vld [vmem:[#allocation12 + $0x40] sm:$0xff]  }
 0x1e0   : > { %v3390_v54 = vld [vmem:[#allocation10 + $0x38] sm:$0xff]  }
 0x1e2   : > { %3007 = vmatpush3.bf16.msra.mxu1 %v3352_v55  ;;  %3029 = vmatpush3.bf16.msra.mxu0 %v3354_v57  ;;  %v3391_v55 = vld [vmem:[#allocation12 + $0xc0] sm:$0xff]  }
 0x1e3   : > { %3008 = vmatprep.subr.bf16.mxu1 %v3355_v58  ;;  %3030 = vmatprep.subr.bf16.mxu0 %v3357_v60 }
 0x1e6   : > { %3009 = vmatpush3.bf16.msra.mxu1 %v3356_v59  ;;  %3031 = vmatpush3.bf16.msra.mxu0 %v3358_v61 }
 0x1e7   : > { %3066 = vmatprep.subr.bf16.mxu0 %v3359_v62  ;;  %3038 = vmatprep.subr.bf16.mxu1 %v3360_v63 }
 0x29c   : > { %v629_v0 = vpop.f32.mrb[0].mxu1  ;;  %v670_v1 = vpop.f32.mrb[4].mxu0 }
 0x29d   : > { %v679_v2 = vmax.f32 %v670_v1, 0.0  ;;  %v631_v3 = vpop.f32.mrb[1].mxu1  ;;  %v672_v4 = vpop.f32.mrb[5].mxu0  ;;  %v677_v5 = vmax.f32 %v629_v0, 0.0 }
 0x29e   : > { %v678_v6 = vmax.f32 %v631_v3, 0.0  ;;  %v680_v7 = vmax.f32 %v672_v4, 0.0  ;;  %v633_v8 = vpop.f32.mrb[2].mxu1  ;;  %v674_v9 = vpop.f32.mrb[6].mxu0 }
 0x29f   : > { %v683_v10 = vpack.c.bf16 %v679_v2, %v679_v2  ;;  %v634_v11 = vpop.f32.mrb[3].mxu1  ;;  %v675_v12 = vpop.f32.mrb[7].mxu0  ;;  %v681_v15 = vpack.c.bf16 %v677_v5, %v677_v5 }
 0x2a0   : > { %v682_v13 = vpack.c.bf16 %v678_v6, %v678_v6  ;;  %v684_v14 = vpack.c.bf16 %v680_v7, %v680_v7  ;;  %v3392_v12 = vld [vmem:[#allocation12 + $0x80] sm:$0xff]  }
 0x2a1   : > { %v688_v17 = vrot.slane %v683_v10, 4 }
 0x2a2   : > { %v686_v16 = vrot.slane %v682_v13, 6  ;;  %v690_v19 = vrot.slane %v684_v14, 2  ;;  %v3393_v14 = vld [vmem:[#allocation12 + $0xc8] sm:$0xff]  }
 0x2a4   : > { %v694_v18 = vsel %vm691_vm3, %v681_v15, %v686_v16  ;;  %v3398_v15 = vld [vmem:[#allocation12] sm:$0xff]   ;;  %v3400_v16 = vld [vmem:[#allocation12 + $0x48] sm:$0xff]  }
 0x2a5   : > { %v697_v20 = vsel %vm695_vm4, %v694_v18, %v688_v17  ;;  %v3394_v17 = vld [vmem:[#allocation12 + $0x88] sm:$0xff]   ;;  %v3395_v18 = vld [vmem:[#allocation12 + $0xd0] sm:$0xff]  }
 0x2a6   : > { %v700_v21 = vsel %vm698_vm5, %v697_v20, %v690_v19  ;;  %v3402_v19 = vld [vmem:[#allocation12 + $0x8] sm:$0xff]   ;;  %v3404_v20 = vld [vmem:[#allocation12 + $0x50] sm:$0xff]  }
 0x2a7   : > { %v703_v24 = vrot.slane %v700_v21, 6  ;;  %872 = vmatprep.mubr.bf16.mxu1 %v700_v21  ;;  %v708_v25 = vrot.slane %v700_v21, 2 }
 0x2a9   : > { %2801 = vmatmul.mubr.msk.bf16.vlgmr.msra.gmra.mrb[4].mxu1 %vm4141_vm6, %v703_v24  ;;  %2818 = vmatprep.mubr.msk.bf16.mxu0 %vm698_vm5, %v708_v25  ;;  %v3406_v24 = vld [vmem:[#allocation12 + $0x10] sm:$0xff]   ;;  %v3401_v25 = vld [vmem:[#allocation12 + $0x98] sm:$0xff]  }
 0x2aa   : > { %1045 = vmatmul.mubr.bf16.vlgmr.msra.gmra.mrb[8].mxu0 %v700_v21  ;;  %3039 = vmatpush3.bf16.msra.mxu1 %v3362_v23  ;;  %v3397_v21 = vld [vmem:[#allocation12 + $0x90] sm:$0xff]   ;;  %v3399_v23 = vld [vmem:[#allocation12 + $0xd8] sm:$0xff]  }
 0x2ab   : > { %3067 = vmatpush3.bf16.msra.mxu0 %v3361_v26  ;;  %3040 = vmatprep.subr.bf16.mxu1 %v3364_v27  ;;  %v3403_v26 = vld [vmem:[#allocation12 + $0xe0] sm:$0xff]  }
 0x2ac   : > { %3068 = vmatprep.subr.bf16.mxu0 %v3363_v28  ;;  %v3405_v27 = vld [vmem:[#allocation12 + $0xa0] sm:$0xff]   ;;  %v3407_v28 = vld [vmem:[#allocation12 + $0xe8] sm:$0xff]  }
 0x2ae   : > { %3041 = vmatpush3.bf16.msra.mxu1 %v3366_v29  ;;  %v3408_v29 = vld [vmem:[#allocation12 + $0x58] sm:$0xff]  }
 0x2af   : > { %3069 = vmatpush3.bf16.msra.mxu0 %v3365_v30  ;;  %3042 = vmatprep.subr.bf16.mxu1 %v3368_v31  ;;  %v3409_v30 = vld [vmem:[#allocation12 + $0xa8] sm:$0xff]   ;;  %v3410_v31 = vld [vmem:[#allocation12 + $0x18] sm:$0xff]  }
 0x2b0   : > { %3070 = vmatprep.subr.bf16.mxu0 %v3367_v32  ;;  %v3411_v32 = vld [vmem:[#allocation12 + $0xf0] sm:$0xff]  }
 0x2b2   : > { %3043 = vmatpush3.bf16.msra.mxu1 %v3370_v33  ;;  %v3412_v33 = vld [vmem:[#allocation12 + $0x60] sm:$0xff]  }
 0x2b3   : > { %3071 = vmatpush3.bf16.msra.mxu0 %v3369_v34  ;;  %3044 = vmatprep.subr.bf16.mxu1 %v3372_v35  ;;  %v3413_v34 = vld [vmem:[#allocation12 + $0xb0] sm:$0xff]   ;;  %v3414_v35 = vld [vmem:[#allocation12 + $0x20] sm:$0xff]  }
 0x2b4   : > { %3072 = vmatprep.subr.bf16.mxu0 %v3371_v36  ;;  %v3415_v36 = vld [vmem:[#allocation12 + $0xf8] sm:$0xff]  }
 0x2b6   : > { %3045 = vmatpush3.bf16.msra.mxu1 %v3374_v37  ;;  %v3416_v37 = vld [vmem:[#allocation12 + $0x68] sm:$0xff]  }
 0x2b7   : > { %3073 = vmatpush3.bf16.msra.mxu0 %v3373_v38  ;;  %3046 = vmatprep.subr.bf16.mxu1 %v3376_v39  ;;  %v3417_v38 = vld [vmem:[#allocation12 + $0xb8] sm:$0xff]   ;;  %v3418_v39 = vld [vmem:[#allocation12 + $0x28] sm:$0xff]  }
 0x2b8   : > { %3074 = vmatprep.subr.bf16.mxu0 %v3375_v40  ;;  %v3419_v40 = vld [vmem:[#allocation12 + $0x70] sm:$0xff]  }
 0x2ba   : > { %3047 = vmatpush3.bf16.msra.mxu1 %v3378_v41  ;;  %v3420_v41 = vld [vmem:[#allocation12 + $0x30] sm:$0xff]  }
 0x2bb   : > { %3075 = vmatpush3.bf16.msra.mxu0 %v3377_v42  ;;  %3048 = vmatprep.subr.bf16.mxu1 %v3380_v44  ;;  %v3421_v42 = vld [vmem:[#allocation12 + $0x78] sm:$0xff]   ;;  %v3425_v44 = vld [vmem:[#allocation13 + $0x104] ss:$8 sps:$4 sm:$0xff]  }
 0x2bc   : > { %3076 = vmatprep.subr.bf16.mxu0 %v3379_v43  ;;  %v3422_v43 = vld [vmem:[#allocation12 + $0x38] sm:$0xff]  }
 0x2be   : > { %3049 = vmatpush3.bf16.msra.mxu1 %v3382_v46 }
 0x2bf   : > { %3077 = vmatpush3.bf16.msra.mxu0 %v3381_v45  ;;  %3050 = vmatprep.subr.bf16.mxu1 %v3384_v48  ;;  %v3440_v45 = vld [vmem:[#allocation13 + $0x4] ss:$8 sps:$4 sm:$0xff]  }
 0x2c0   : > { %3078 = vmatprep.subr.bf16.mxu0 %v3383_v47 }
 0x2c2   : > { %3051 = vmatpush3.bf16.msra.mxu1 %v3386_v50 }
 0x2c3   : > { %3079 = vmatpush3.bf16.msra.mxu0 %v3385_v49  ;;  %3052 = vmatprep.subr.bf16.mxu1 %v3388_v52 }
 0x2c4   : > { %3080 = vmatprep.subr.bf16.mxu0 %v3387_v51 }
 0x2c6   : > { %3053 = vmatpush3.bf16.msra.mxu1 %v3390_v54 }
 0x2c7   : > { %3081 = vmatpush3.bf16.msra.mxu0 %v3389_v53  ;;  %3094 = vmatprep.subr.bf16.mxu1 %v3396_v56 }
 0x2c8   : > { %3134 = vmatprep.subr.bf16.mxu0 %v3391_v55 }
 0x37c   : > { %v3010_v57 = vpop.f32.mrb[4].mxu1 }
 0x37d   : > { %v3011_v58 = vpop.f32.mrb[5].mxu1  ;;  %v3032_v59 = vpop.f32.mrb[8].mxu0 }
 0x37e   : > { %v3012_v60 = vadd.f32 %v3011_v58, %v3010_v57  ;;  %v3013_v61 = vpop.f32.mrb[6].mxu1  ;;  %v3033_v62 = vpop.f32.mrb[9].mxu0 }
 0x37f   : > { %v3034_v63 = vadd.f32 %v3033_v62, %v3032_v59  ;;  %v3014_v0 = vpop.f32.mrb[7].mxu1  ;;  %v3035_v1 = vpop.f32.mrb[10].mxu0 }
 0x380   : > { %v3015_v2 = vadd.f32 %v3014_v0, %v3013_v61  ;;  %v3036_v3 = vpop.f32.mrb[11].mxu0  ;;  %v881_v5 = vmax.f32 %v3012_v60, 0.0  ;;  %v3423_v0 = vld [vmem:[#allocation13 + $0x100] ss:$8 sps:$4 sm:$0xff]  }
 0x381   : > { %v3037_v4 = vadd.f32 %v3036_v3, %v3035_v1  ;;  %v1053_v7 = vmax.f32 %v3034_v63, 0.0 }
 0x382   : > { %v882_v6 = vmax.f32 %v3015_v2, 0.0 }
 0x383   : > { %v1054_v8 = vmax.f32 %v3037_v4, 0.0  ;;  %v3428_v4 = vld [vmem:[#allocation13 + $0x114] ss:$8 sps:$4 sm:$0xff]  }
 0x384   : > { %v1055_v9 = vpack.c.bf16 %v882_v6, %v881_v5 }
 0x385   : > { %v1056_v10 = vpack.c.bf16 %v1054_v8, %v1053_v7 }
 0x386   : > { %1227 = vmatprep.mubr.bf16.mxu1 %v1055_v9  ;;  %v1063_v11 = vrot.slane %v1055_v9, 2 }
 0x387   : > { %v1058_v13 = vrot.slane %v1056_v10, 6  ;;  %1409 = vmatprep.mubr.bf16.mxu0 %v1056_v10 }
 0x388   : > { %1410 = vmatmul.mubr.bf16.vlgmr.msra.gmra.mrb[12].mxu0 %v1055_v9 }
 0x389   : > { %2836 = vmatmul.mubr.msk.bf16.vlgmr.msra.gmra.mrb[8].mxu1 %vm4141_vm6, %v1058_v13  ;;  %2853 = vmatprep.mubr.msk.bf16.mxu0 %vm698_vm5, %v1063_v11  ;;  %v3426_v13 = vld [vmem:[#allocation13 + $0x110] ss:$8 sps:$4 sm:$0xff]  }
 0x38a   : > { %1235 = vmatprep.mubr.bf16.mxu1 %v1056_v10  ;;  %3135 = vmatpush3.bf16.msra.mxu0 %v3392_v12 }
 0x38b   : > { %3136 = vmatprep.subr.bf16.mxu0 %v3393_v14  ;;  %3095 = vmatpush3.bf16.msra.mxu1 %v3398_v15  ;;  %v3431_v15 = vld [vmem:[#allocation13 + $0x124] ss:$8 sps:$4 sm:$0xff]  }
 0x38c   : > { %3096 = vmatprep.subr.bf16.mxu1 %v3400_v16 }
 0x38e   : > { %3137 = vmatpush3.bf16.msra.mxu0 %v3394_v17 }
 0x38f   : > { %3138 = vmatprep.subr.bf16.mxu0 %v3395_v18  ;;  %3097 = vmatpush3.bf16.msra.mxu1 %v3402_v19 }
 0x390   : > { %1418 = vmatmul.mubr.bf16.gmra.mrb[16].mxu0 %v1056_v10  ;;  %3098 = vmatprep.subr.bf16.mxu1 %v3404_v20 }
 0x391   : > { %1236 = vmatmul.mubr.bf16.gmra.mrb[12].mxu1 %v1055_v9 }
 0x392   : > { %3139 = vmatpush3.bf16.msra.mxu0 %v3397_v21 }
 0x393   : > { %3140 = vmatprep.subr.bf16.mxu0 %v3399_v23  ;;  %3099 = vmatpush3.bf16.msra.mxu1 %v3406_v24  ;;  %v3429_v24 = vld [vmem:[#allocation13 + $0x120] ss:$8 sps:$4 sm:$0xff]  }
 0x394   : > { %3100 = vmatprep.subr.bf16.mxu1 %v3408_v29  ;;  %v3444_v29 = vld [vmem:[#allocation13 + $0x10] ss:$8 sps:$4 sm:$0xff]  }
 0x396   : > { %3141 = vmatpush3.bf16.msra.mxu0 %v3401_v25  ;;  %v3438_v25 = vld [vmem:[#allocation13] ss:$8 sps:$4 sm:$0xff]  }
 0x397   : > { %3142 = vmatprep.subr.bf16.mxu0 %v3403_v26  ;;  %3101 = vmatpush3.bf16.msra.mxu1 %v3410_v31  ;;  %v3434_v26 = vld [vmem:[#allocation13 + $0x134] ss:$8 sps:$4 sm:$0xff]   ;;  %v3452_v31 = vld [vmem:[#allocation13 + $0x24] ss:$8 sps:$4 sm:$0xff]  }
 0x398   : > { %3102 = vmatprep.subr.bf16.mxu1 %v3412_v33  ;;  %v3450_v33 = vld [vmem:[#allocation13 + $0x20] ss:$8 sps:$4 sm:$0xff]  }
 0x39a   : > { %3143 = vmatpush3.bf16.msra.mxu0 %v3405_v27  ;;  %v3446_v27 = vld [vmem:[#allocation13 + $0x14] ss:$8 sps:$4 sm:$0xff]  }
 0x39b   : > { %3144 = vmatprep.subr.bf16.mxu0 %v3407_v28  ;;  %3103 = vmatpush3.bf16.msra.mxu1 %v3414_v35  ;;  %v3432_v28 = vld [vmem:[#allocation13 + $0x130] ss:$8 sps:$4 sm:$0xff]   ;;  %v3443_v35 = vld [vmem:[#allocation13 + $0x154] ss:$8 sps:$4 sm:$0xff]  }
 0x39c   : > { %3104 = vmatprep.subr.bf16.mxu1 %v3416_v37  ;;  %v3441_v37 = vld [vmem:[#allocation13 + $0x150] ss:$8 sps:$4 sm:$0xff]  }
 0x39e   : > { %3145 = vmatpush3.bf16.msra.mxu0 %v3409_v30  ;;  %v3437_v30 = vld [vmem:[#allocation13 + $0x144] ss:$8 sps:$4 sm:$0xff]  }
 0x39f   : > { %3146 = vmatprep.subr.bf16.mxu0 %v3411_v32  ;;  %3105 = vmatpush3.bf16.msra.mxu1 %v3418_v39  ;;  %v3435_v32 = vld [vmem:[#allocation13 + $0x140] ss:$8 sps:$4 sm:$0xff]   ;;  %v3449_v39 = vld [vmem:[#allocation13 + $0x164] ss:$8 sps:$4 sm:$0xff]  }
 0x3a0   : > { %3106 = vmatprep.subr.bf16.mxu1 %v3419_v40  ;;  %v3464_v40 = vld [vmem:[#allocation13 + $0x44] ss:$8 sps:$4 sm:$0xff]  }
 0x3a2   : > { %3147 = vmatpush3.bf16.msra.mxu0 %v3413_v34 }
 0x3a3   : > { %3148 = vmatprep.subr.bf16.mxu0 %v3415_v36  ;;  %3107 = vmatpush3.bf16.msra.mxu1 %v3420_v41  ;;  %v3458_v36 = vld [vmem:[#allocation13 + $0x34] ss:$8 sps:$4 sm:$0xff]   ;;  %v3447_v41 = vld [vmem:[#allocation13 + $0x160] ss:$8 sps:$4 sm:$0xff]  }
 0x3a4   : > { %3108 = vmatprep.subr.bf16.mxu1 %v3421_v42  ;;  %v3462_v42 = vld [vmem:[#allocation13 + $0x40] ss:$8 sps:$4 sm:$0xff]  }
 0x3a6   : > { %3149 = vmatpush3.bf16.msra.mxu0 %v3417_v38  ;;  %v3456_v38 = vld [vmem:[#allocation13 + $0x30] ss:$8 sps:$4 sm:$0xff]  }
 0x3a7   : > { %3109 = vmatpush3.bf16.msra.mxu1 %v3422_v43  ;;  %2395 = vmatprep.subr.bf16.mxu0 %v3425_v44  ;;  %v3455_v43 = vld [vmem:[#allocation13 + $0x174] ss:$8 sps:$4 sm:$0xff]  }
 0x3a8   : > { %2057 = vmatprep.subr.bf16.mxu1 %v3440_v45  ;;  %v3470_v44 = vld [vmem:[#allocation13 + $0x54] ss:$8 sps:$4 sm:$0xff]   ;;  %v3453_v45 = vld [vmem:[#allocation13 + $0x170] ss:$8 sps:$4 sm:$0xff]  }
 0x45b   : > { %v3082_v46 = vpop.f32.mrb[12].mxu0 }
 0x45c   : > { %v3054_v47 = vpop.f32.mrb[8].mxu1  ;;  %v3083_v48 = vpop.f32.mrb[13].mxu0 }
 0x45d   : > { %v3084_v49 = vadd.f32 %v3083_v48, %v3082_v46  ;;  %v3055_v50 = vpop.f32.mrb[9].mxu1  ;;  %v3085_v51 = vpop.f32.mrb[14].mxu0  ;;  %v3468_v46 = vld [vmem:[#allocation13 + $0x50] ss:$8 sps:$4 sm:$0xff]   ;;  %v3476_v48 = vld [vmem:[#allocation13 + $0x64] ss:$8 sps:$4 sm:$0xff]  }
 0x45e   : > { %v3056_v52 = vadd.f32 %v3055_v50, %v3054_v47  ;;  %v3057_v53 = vpop.f32.mrb[10].mxu1  ;;  %v3086_v54 = vpop.f32.mrb[15].mxu0  ;;  %v3461_v47 = vld [vmem:[#allocation13 + $0x184] ss:$8 sps:$4 sm:$0xff]   ;;  %v3474_v50 = vld [vmem:[#allocation13 + $0x60] ss:$8 sps:$4 sm:$0xff]  }
 0x45f   : > { %v3087_v55 = vadd.f32 %v3086_v54, %v3085_v51  ;;  %v3058_v56 = vpop.f32.mrb[11].mxu1  ;;  %v1426_v58 = vmax.f32 %v3084_v49, 0.0  ;;  %v3459_v49 = vld [vmem:[#allocation13 + $0x180] ss:$8 sps:$4 sm:$0xff]   ;;  %v3467_v51 = vld [vmem:[#allocation13 + $0x194] ss:$8 sps:$4 sm:$0xff]  }
 0x460   : > { %v3059_v57 = vadd.f32 %v3058_v56, %v3057_v53  ;;  %v1244_v60 = vmax.f32 %v3056_v52, 0.0  ;;  %v3465_v52 = vld [vmem:[#allocation13 + $0x190] ss:$8 sps:$4 sm:$0xff]   ;;  %v3473_v53 = vld [vmem:[#allocation13 + $0x1a4] ss:$8 sps:$4 sm:$0xff]  }
 0x461   : > { %v1427_v59 = vmax.f32 %v3087_v55, 0.0  ;;  %v3471_v54 = vld [vmem:[#allocation13 + $0x1a0] ss:$8 sps:$4 sm:$0xff]   ;;  %v3479_v55 = vld [vmem:[#allocation13 + $0x1b4] ss:$8 sps:$4 sm:$0xff]  }
 0x462   : > { %v1245_v61 = vmax.f32 %v3059_v57, 0.0  ;;  %v3477_v56 = vld [vmem:[#allocation13 + $0x1b0] ss:$8 sps:$4 sm:$0xff]   ;;  %v3482_v57 = vld [vmem:[#allocation13 + $0x74] ss:$8 sps:$4 sm:$0xff]  }
 0x463   : > { %v4151_v62 = vpack.c.bf16 %v1427_v59, %v1426_v58  ;;  %v3088_v63 = vpop.f32.mrb[16].mxu0  ;;  %v3480_v58 = vld [vmem:[#allocation13 + $0x70] ss:$8 sps:$4 sm:$0xff]   ;;  %v3485_v59 = vld [vmem:[#allocation13 + $0x1c4] ss:$8 sps:$4 sm:$0xff]  }
 0x464   : > { %v1430_v1 = vpack.c.bf16 %v1245_v61, %v1244_v60  ;;  %v3060_v2 = vpop.f32.mrb[12].mxu1  ;;  %v3089_v3 = vpop.f32.mrb[17].mxu0  ;;  %v3483_v60 = vld [vmem:[#allocation13 + $0x1c0] ss:$8 sps:$4 sm:$0xff]   ;;  %v3488_v61 = vld [vmem:[#allocation13 + $0x84] ss:$8 sps:$4 sm:$0xff]  }
 0x465   : > { %v3090_v5 = vadd.f32 %v3089_v3, %v3088_v63  ;;  %v3061_v6 = vpop.f32.mrb[13].mxu1  ;;  %v3091_v7 = vpop.f32.mrb[18].mxu0  ;;  %1806 = vmatprep.mubr.bf16.mxu0 %v4151_v62  ;;  %v3491_v63 = vld [vmem:[#allocation13 + $0x1d4] ss:$8 sps:$4 sm:$0xff]   ;;  %v3497_v3 = vld [vmem:[#allocation13 + $0x1e4] ss:$8 sps:$4 sm:$0xff]  }
 0x466   : > { %v3062_v8 = vadd.f32 %v3061_v6, %v3060_v2  ;;  %v3063_v9 = vpop.f32.mrb[14].mxu1  ;;  %v3092_v10 = vpop.f32.mrb[19].mxu0  ;;  %1604 = vmatprep.mubr.bf16.mxu1 %v1430_v1  ;;  %1807 = vmatmul.mubr.bf16.vlgmr.msra.gmra.mrb[20].mxu0 %v1430_v1  ;;  %v1440_v34 = vrot.slane %v1430_v1, 2  ;;  %v3492_v2 = vld [vmem:[#allocation13 + $0x90] ss:$8 sps:$4 sm:$0xff]  }
 0x467   : > { %v3093_v11 = vadd.f32 %v3092_v10, %v3091_v7  ;;  %v3064_v12 = vpop.f32.mrb[15].mxu1  ;;  %2396 = vmatpush1.bf16.msra.mxu0 %v3423_v0  ;;  %v1428_v16 = vmax.f32 %v3090_v5, 0.0  ;;  %v3489_v0 = vld [vmem:[#allocation13 + $0x1d0] ss:$8 sps:$4 sm:$0xff]   ;;  %v3500_v5 = vld [vmem:[#allocation13 + $0xa4] ss:$8 sps:$4 sm:$0xff]  }
 0x468   : > { %v3065_v14 = vadd.f32 %v3064_v12, %v3063_v9  ;;  %2397 = vmatprep.subr.bf16.mxu0 %v3428_v4  ;;  %v1246_v18 = vmax.f32 %v3062_v8, 0.0  ;;  %v3495_v4 = vld [vmem:[#allocation13 + $0x1e0] ss:$8 sps:$4 sm:$0xff]   ;;  %v3503_v7 = vld [vmem:[#allocation13 + $0x1f4] ss:$8 sps:$4 sm:$0xff]  }
 0x469   : > { %v1429_v17 = vmax.f32 %v3093_v11, 0.0  ;;  %v3498_v6 = vld [vmem:[#allocation13 + $0xa0] ss:$8 sps:$4 sm:$0xff]   ;;  %v3501_v8 = vld [vmem:[#allocation13 + $0x1f0] ss:$8 sps:$4 sm:$0xff]  }
 0x46a   : > { %v1247_v19 = vmax.f32 %v3065_v14, 0.0  ;;  %v3506_v9 = vld [vmem:[#allocation13 + $0xb4] ss:$8 sps:$4 sm:$0xff]   ;;  %v3504_v10 = vld [vmem:[#allocation13 + $0xb0] ss:$8 sps:$4 sm:$0xff]  }
 0x46b   : > { %v1433_v20 = vpack.c.bf16 %v1429_v17, %v1428_v16  ;;  %2398 = vmatpush1.bf16.msra.mxu0 %v3426_v13  ;;  %v3509_v11 = vld [vmem:[#allocation13 + $0xc4] ss:$8 sps:$4 sm:$0xff]   ;;  %v3507_v12 = vld [vmem:[#allocation13 + $0xc0] ss:$8 sps:$4 sm:$0xff]   ;;  %v3512_v13 = vld [vmem:[#allocation13 + $0xd4] ss:$8 sps:$4 sm:$0xff]  }
 0x46c   : > { %v4154_v21 = vpack.c.bf16 %v1247_v19, %v1246_v18  ;;  %2399 = vmatprep.subr.bf16.mxu0 %v3431_v15  ;;  %v3510_v14 = vld [vmem:[#allocation13 + $0xd0] ss:$8 sps:$4 sm:$0xff]   ;;  %v3515_v15 = vld [vmem:[#allocation13 + $0xe4] ss:$8 sps:$4 sm:$0xff]   ;;  %v3513_v16 = vld [vmem:[#allocation13 + $0xe0] ss:$8 sps:$4 sm:$0xff]  }
 0x46d   : > { %v1435_v23 = vrot.slane %v1433_v20, 6  ;;  %v3518_v17 = vld [vmem:[#allocation13 + $0xf4] ss:$8 sps:$4 sm:$0xff]   ;;  %v3516_v18 = vld [vmem:[#allocation13 + $0xf0] ss:$8 sps:$4 sm:$0xff]  }
 0x46e   : > { %1814 = vmatprep.mubr.bf16.mxu0 %v4154_v21 }
 0x46f   : > { %2871 = vmatmul.mubr.msk.bf16.vlgmr.msra.gmra.mrb[16].mxu1 %vm4141_vm6, %v1435_v23  ;;  %1815 = vmatmul.mubr.bf16.gmra.mrb[24].mxu0 %v4151_v62 }
 0x470   : > { %1612 = vmatprep.mubr.bf16.mxu1 %v4151_v62  ;;  %1822 = vmatprep.mubr.bf16.mxu0 %v1433_v20 }
 0x471   : > { %2400 = vmatpush1.bf16.msra.mxu0 %v3429_v24  ;;  %2058 = vmatpush1.bf16.msra.mxu1 %v3438_v25 }
 0x472   : > { %2401 = vmatprep.subr.bf16.mxu0 %v3434_v26  ;;  %2059 = vmatprep.subr.bf16.mxu1 %v3446_v27 }
 0x475   : > { %2402 = vmatpush1.bf16.msra.mxu0 %v3432_v28  ;;  %2060 = vmatpush1.bf16.msra.mxu1 %v3444_v29 }
 0x476   : > { %2403 = vmatprep.subr.bf16.mxu0 %v3437_v30  ;;  %2061 = vmatprep.subr.bf16.mxu1 %v3452_v31 }
 0x477   : > { %1613 = vmatmul.mubr.bf16.gmra.mrb[20].mxu1 %v1430_v1  ;;  %1823 = vmatmul.mubr.bf16.gmra.mrb[28].mxu0 %v4154_v21  ;;  %v3494_v1 = vld [vmem:[#allocation13 + $0x94] ss:$8 sps:$4 sm:$0xff]  }
 0x478   : > { %1620 = vmatprep.mubr.bf16.mxu1 %v4154_v21  ;;  %2888 = vmatprep.mubr.msk.bf16.mxu0 %vm698_vm5, %v1440_v34 }
 0x479   : > { %2404 = vmatpush1.bf16.msra.mxu0 %v3435_v32  ;;  %2062 = vmatpush1.bf16.msra.mxu1 %v3450_v33 }
 0x47a   : > { %2405 = vmatprep.subr.bf16.mxu0 %v3443_v35  ;;  %2063 = vmatprep.subr.bf16.mxu1 %v3458_v36 }
 0x47d   : > { %2406 = vmatpush1.bf16.msra.mxu0 %v3441_v37  ;;  %2064 = vmatpush1.bf16.msra.mxu1 %v3456_v38 }
 0x47e   : > { %2407 = vmatprep.subr.bf16.mxu0 %v3449_v39  ;;  %2065 = vmatprep.subr.bf16.mxu1 %v3464_v40 }
 0x47f   : > { %1621 = vmatmul.mubr.bf16.gmra.mrb[24].mxu1 %v4151_v62  ;;  %1831 = vmatmul.mubr.bf16.gmra.mrb[32].mxu0 %v1433_v20  ;;  %v3486_v62 = vld [vmem:[#allocation13 + $0x80] ss:$8 sps:$4 sm:$0xff]  }
 0x480   : > { %1628 = vmatprep.mubr.bf16.mxu1 %v1433_v20 }
 0x481   : > { %2408 = vmatpush1.bf16.msra.mxu0 %v3447_v41  ;;  %2066 = vmatpush1.bf16.msra.mxu1 %v3462_v42 }
 0x482   : > { %2409 = vmatprep.subr.bf16.mxu0 %v3455_v43  ;;  %2067 = vmatprep.subr.bf16.mxu1 %v3470_v44 }
 0x485   : > { %2410 = vmatpush1.bf16.msra.mxu0 %v3453_v45  ;;  %2068 = vmatpush1.bf16.msra.mxu1 %v3468_v46 }
 0x486   : > { %2411 = vmatprep.subr.bf16.mxu0 %v3461_v47  ;;  %2069 = vmatprep.subr.bf16.mxu1 %v3476_v48 }
 0x487   : > { %1629 = vmatmul.mubr.bf16.gmra.mrb[28].mxu1 %v4154_v21 }
 0x489   : > { %2412 = vmatpush1.bf16.msra.mxu0 %v3459_v49  ;;  %2070 = vmatpush1.bf16.msra.mxu1 %v3474_v50 }
 0x48a   : > { %2413 = vmatprep.subr.bf16.mxu0 %v3467_v51  ;;  %2071 = vmatprep.subr.bf16.mxu1 %v3482_v57 }
 0x48d   : > { %2414 = vmatpush1.bf16.msra.mxu0 %v3465_v52  ;;  %2072 = vmatpush1.bf16.msra.mxu1 %v3480_v58 }
 0x48e   : > { %2415 = vmatprep.subr.bf16.mxu0 %v3473_v53  ;;  %2073 = vmatprep.subr.bf16.mxu1 %v3488_v61 }
 0x491   : > { %2416 = vmatpush1.bf16.msra.mxu0 %v3471_v54  ;;  %2074 = vmatpush1.bf16.msra.mxu1 %v3486_v62 }
 0x492   : > { %2417 = vmatprep.subr.bf16.mxu0 %v3479_v55  ;;  %2075 = vmatprep.subr.bf16.mxu1 %v3494_v1 }
 0x495   : > { %2418 = vmatpush1.bf16.msra.mxu0 %v3477_v56  ;;  %2076 = vmatpush1.bf16.msra.mxu1 %v3492_v2 }
 0x496   : > { %2419 = vmatprep.subr.bf16.mxu0 %v3485_v59  ;;  %2077 = vmatprep.subr.bf16.mxu1 %v3500_v5 }
 0x499   : > { %2420 = vmatpush1.bf16.msra.mxu0 %v3483_v60  ;;  %2078 = vmatpush1.bf16.msra.mxu1 %v3498_v6 }
 0x49a   : > { %2421 = vmatprep.subr.bf16.mxu0 %v3491_v63  ;;  %2079 = vmatprep.subr.bf16.mxu1 %v3506_v9 }
 0x49d   : > { %2422 = vmatpush1.bf16.msra.mxu0 %v3489_v0  ;;  %2080 = vmatpush1.bf16.msra.mxu1 %v3504_v10 }
 0x49e   : > { %2423 = vmatprep.subr.bf16.mxu0 %v3497_v3  ;;  %2081 = vmatprep.subr.bf16.mxu1 %v3509_v11 }
 0x4a1   : > { %2424 = vmatpush1.bf16.msra.mxu0 %v3495_v4  ;;  %2082 = vmatpush1.bf16.msra.mxu1 %v3507_v12 }
 0x4a2   : > { %2425 = vmatprep.subr.bf16.mxu0 %v3503_v7  ;;  %2083 = vmatprep.subr.bf16.mxu1 %v3512_v13 }
 0x4a5   : > { %2426 = vmatpush1.bf16.msra.mxu0 %v3501_v8  ;;  %2084 = vmatpush1.bf16.msra.mxu1 %v3510_v14 }
 0x4a6   : > { %2085 = vmatprep.subr.bf16.mxu1 %v3515_v15 }
 0x4a9   : > { %2086 = vmatpush1.bf16.msra.mxu1 %v3513_v16 }
 0x4aa   : > { %2087 = vmatprep.subr.bf16.mxu1 %v3518_v17 }
 0x4ad   : > { %2088 = vmatpush1.bf16.msra.mxu1 %v3516_v18 }
 0x539   : > { %v3150_v19 = vpop.f32.mrb[20].mxu0 }
 0x53a   : > { %v3151_v20 = vpop.f32.mrb[21].mxu0 }
 0x53b   : > { %v3152_v21 = vadd.f32 %v3151_v20, %v3150_v19  ;;  %v3153_v23 = vpop.f32.mrb[22].mxu0 }
 0x53c   : > { %v3154_v24 = vpop.f32.mrb[23].mxu0 }
 0x53d   : > { %v3155_v25 = vadd.f32 %v3154_v24, %v3153_v23  ;;  %v1839_v26 = vmax.f32 %v3152_v21, 0.0 }
 0x53f   : > { %v1840_v27 = vmax.f32 %v3155_v25, 0.0 }
 0x541   : > { %v4166_v28 = vpack.c.bf16 %v1840_v27, %v1839_v26 }
 0x542   : > { %v3110_v29 = vpop.f32.mrb[16].mxu1  ;;  %v3156_v30 = vpop.f32.mrb[24].mxu0 }
 0x543   : > { %v3111_v31 = vpop.f32.mrb[17].mxu1  ;;  %v3157_v32 = vpop.f32.mrb[25].mxu0  ;;  %2427 = vmatprep.mubr.bf16.mxu0 %v4166_v28 }
 0x544   : > { %v3112_v33 = vadd.f32 %v3111_v31, %v3110_v29  ;;  %v3158_v34 = vadd.f32 %v3157_v32, %v3156_v30  ;;  %v3113_v35 = vpop.f32.mrb[18].mxu1  ;;  %v3159_v36 = vpop.f32.mrb[26].mxu0 }
 0x545   : > { %v3114_v37 = vpop.f32.mrb[19].mxu1  ;;  %v3160_v38 = vpop.f32.mrb[27].mxu0 }
 0x546   : > { %v3115_v39 = vadd.f32 %v3114_v37, %v3113_v35  ;;  %v3161_v40 = vadd.f32 %v3160_v38, %v3159_v36  ;;  %v1637_v41 = vmax.f32 %v3112_v33, 0.0  ;;  %v1841_v42 = vmax.f32 %v3158_v34, 0.0 }
 0x548   : > { %v1638_v43 = vmax.f32 %v3115_v39, 0.0  ;;  %v1842_v44 = vmax.f32 %v3161_v40, 0.0 }
 0x54a   : > { %v4169_v45 = vpack.c.bf16 %v1638_v43, %v1637_v41  ;;  %v4171_v46 = vpack.c.bf16 %v1842_v44, %v1841_v42  ;;  %v3116_v47 = vpop.f32.mrb[20].mxu1  ;;  %v3162_v48 = vpop.f32.mrb[28].mxu0 }
 0x54b   : > { %v3117_v49 = vpop.f32.mrb[21].mxu1  ;;  %v3163_v50 = vpop.f32.mrb[29].mxu0 }
 0x54c   : > { %v3118_v51 = vadd.f32 %v3117_v49, %v3116_v47  ;;  %v3164_v52 = vadd.f32 %v3163_v50, %v3162_v48  ;;  %v3119_v53 = vpop.f32.mrb[22].mxu1  ;;  %v3165_v54 = vpop.f32.mrb[30].mxu0  ;;  %2089 = vmatprep.mubr.bf16.mxu1 %v4169_v45  ;;  %2428 = vmatmul.mubr.bf16.vlgmr.msra.gmra.mrb[36].mxu0 %v4169_v45  ;;  %v1861_v22 = vrot.slane %v4169_v45, 2 }
 0x54d   : > { %v3120_v55 = vpop.f32.mrb[23].mxu1  ;;  %v3166_v56 = vpop.f32.mrb[31].mxu0 }
 0x54e   : > { %v3121_v57 = vadd.f32 %v3120_v55, %v3119_v53  ;;  %v3167_v58 = vadd.f32 %v3166_v56, %v3165_v54  ;;  %v1639_v59 = vmax.f32 %v3118_v51, 0.0  ;;  %v1843_v60 = vmax.f32 %v3164_v52, 0.0 }
 0x550   : > { %v1640_v61 = vmax.f32 %v3121_v57, 0.0  ;;  %v1844_v62 = vmax.f32 %v3167_v58, 0.0 }
 0x552   : > { %v1848_v63 = vpack.c.bf16 %v1640_v61, %v1639_v59  ;;  %v1853_v0 = vpack.c.bf16 %v1844_v62, %v1843_v60  ;;  %v3122_v1 = vpop.f32.mrb[24].mxu1  ;;  %v3168_v2 = vpop.f32.mrb[32].mxu0 }
 0x553   : > { %v3123_v3 = vpop.f32.mrb[25].mxu1  ;;  %v3169_v4 = vpop.f32.mrb[33].mxu0 }
 0x554   : > { %v3124_v5 = vadd.f32 %v3123_v3, %v3122_v1  ;;  %v3170_v6 = vadd.f32 %v3169_v4, %v3168_v2  ;;  %v3125_v7 = vpop.f32.mrb[26].mxu1  ;;  %v3171_v8 = vpop.f32.mrb[34].mxu0  ;;  %2437 = vmatprep.mubr.bf16.mxu0 %v1848_v63 }
 0x555   : > { %v3126_v9 = vpop.f32.mrb[27].mxu1  ;;  %v3172_v10 = vpop.f32.mrb[35].mxu0  ;;  %2438 = vmatmul.mubr.bf16.gmra.mrb[40].mxu0 %v4166_v28 }
 0x556   : > { %v3127_v11 = vadd.f32 %v3126_v9, %v3125_v7  ;;  %v3173_v12 = vadd.f32 %v3172_v10, %v3171_v8  ;;  %2447 = vmatprep.mubr.bf16.mxu0 %v4171_v46  ;;  %v1641_v13 = vmax.f32 %v3124_v5, 0.0  ;;  %v1845_v14 = vmax.f32 %v3170_v6, 0.0 }
 0x558   : > { %v1642_v15 = vmax.f32 %v3127_v11, 0.0  ;;  %v1846_v16 = vmax.f32 %v3173_v12, 0.0 }
 0x55a   : > { %v1849_v17 = vpack.c.bf16 %v1642_v15, %v1641_v13  ;;  %v1854_v18 = vpack.c.bf16 %v1846_v16, %v1845_v14  ;;  %v3128_v19 = vpop.f32.mrb[28].mxu1 }
 0x55b   : > { %v3129_v20 = vpop.f32.mrb[29].mxu1 }
 0x55c   : > { %v1856_v21 = vrot.slane %v1854_v18, 6  ;;  %v3130_v23 = vadd.f32 %v3129_v20, %v3128_v19  ;;  %v3131_v24 = vpop.f32.mrb[30].mxu1 }
 0x55d   : > { %v3132_v25 = vpop.f32.mrb[31].mxu1  ;;  %2448 = vmatmul.mubr.bf16.gmra.mrb[44].mxu0 %v1848_v63 }
 0x55e   : > { %v3133_v26 = vadd.f32 %v3132_v25, %v3131_v24  ;;  %2922 = vmatmul.mubr.msk.bf16.vlgmr.msra.gmra.mrb[32].mxu1 %vm4141_vm6, %v1856_v21  ;;  %2457 = vmatprep.mubr.bf16.mxu0 %v1849_v17  ;;  %v1643_v27 = vmax.f32 %v3130_v23, 0.0 }
 0x55f   : > { %2099 = vmatprep.mubr.bf16.mxu1 %v4166_v28 }
 0x560   : > { %v1644_v29 = vmax.f32 %v3133_v26, 0.0 }
 0x562   : > { %v1850_v30 = vpack.c.bf16 %v1644_v29, %v1643_v27 }
 0x565   : > { %2458 = vmatmul.mubr.bf16.gmra.mrb[48].mxu0 %v4171_v46 }
 0x566   : > { %2100 = vmatmul.mubr.bf16.gmra.mrb[36].mxu1 %v4169_v45  ;;  %2467 = vmatprep.mubr.bf16.mxu0 %v1853_v0 }
 0x567   : > { %2109 = vmatprep.mubr.bf16.mxu1 %v1848_v63 }
 0x56d   : > { %2468 = vmatmul.mubr.bf16.gmra.mrb[52].mxu0 %v1849_v17 }
 0x56e   : > { %2110 = vmatmul.mubr.bf16.gmra.mrb[40].mxu1 %v4166_v28  ;;  %2477 = vmatprep.mubr.bf16.mxu0 %v1850_v30 }
 0x56f   : > { %2119 = vmatprep.mubr.bf16.mxu1 %v4171_v46 }
 0x575   : > { %2478 = vmatmul.mubr.bf16.gmra.mrb[56].mxu0 %v1853_v0 }
 0x576   : > { %2120 = vmatmul.mubr.bf16.gmra.mrb[44].mxu1 %v1848_v63  ;;  %2487 = vmatprep.mubr.bf16.mxu0 %v1854_v18 }
 0x577   : > { %2129 = vmatprep.mubr.bf16.mxu1 %v1849_v17 }
 0x57d   : > { %2488 = vmatmul.mubr.bf16.gmra.mrb[60].mxu0 %v1850_v30 }
 0x57e   : > { %2130 = vmatmul.mubr.bf16.gmra.mrb[48].mxu1 %v4171_v46  ;;  %2955 = vmatprep.mubr.msk.bf16.mxu0 %vm698_vm5, %v1861_v22 }
 0x57f   : > { %2139 = vmatprep.mubr.bf16.mxu1 %v1853_v0 }
 0x585   : > { %2498 = vmatmul.mubr.bf16.gmra.mrb[64].mxu0 %v1854_v18 }
 0x586   : > { %2140 = vmatmul.mubr.bf16.gmra.mrb[52].mxu1 %v1849_v17 }
 0x587   : > { %2149 = vmatprep.mubr.bf16.mxu1 %v1850_v30 }
 0x58e   : > { %2150 = vmatmul.mubr.bf16.gmra.mrb[56].mxu1 %v1853_v0 }
 0x58f   : > { %2159 = vmatprep.mubr.bf16.mxu1 %v1854_v18 }
 0x596   : > { %2160 = vmatmul.mubr.bf16.gmra.mrb[60].mxu1 %v1850_v30 }
 0x61f   : > { %v2429_v28 = vpop.f32.mrb[36].mxu0 }
 0x620   : > { %v2508_v31 = vmax.f32 %v2429_v28, 0.0  ;;  %v2431_v32 = vpop.f32.mrb[37].mxu0 }
 0x621   : > { %v2509_v33 = vmax.f32 %v2431_v32, 0.0  ;;  %v2433_v34 = vpop.f32.mrb[38].mxu0 }
 0x622   : > { %2956 = vst [vmem:[%s4192_s17 + $0x100] sm:$0xff] %v2508_v31  ;;  %v2510_v35 = vmax.f32 %v2433_v34, 0.0  ;;  %v2435_v36 = vpop.f32.mrb[39].mxu0 }
 0x623   : > { %2957 = vst [vmem:[%s4192_s17 + $0x108] sm:$0xff] %v2509_v33  ;;  %v2511_v37 = vmax.f32 %v2435_v36, 0.0 }
 0x624   : > { %2958 = vst [vmem:[%s4192_s17 + $0x110] sm:$0xff] %v2510_v35 }
 0x625   : > { %2959 = vst [vmem:[%s4192_s17 + $0x118] sm:$0xff] %v2511_v37 }
 0x628   : > { %v2439_v38 = vpop.f32.mrb[40].mxu0 }
 0x629   : > { %v2512_v39 = vmax.f32 %v2439_v38, 0.0  ;;  %v2441_v40 = vpop.f32.mrb[41].mxu0 }
 0x62a   : > { %v2513_v41 = vmax.f32 %v2441_v40, 0.0  ;;  %v2443_v42 = vpop.f32.mrb[42].mxu0 }
 0x62b   : > { %2960 = vst [vmem:[%s4192_s17 + $0x120] sm:$0xff] %v2512_v39  ;;  %v2514_v43 = vmax.f32 %v2443_v42, 0.0  ;;  %v2445_v44 = vpop.f32.mrb[43].mxu0 }
 0x62c   : > { %2961 = vst [vmem:[%s4192_s17 + $0x128] sm:$0xff] %v2513_v41  ;;  %v2515_v45 = vmax.f32 %v2445_v44, 0.0 }
 0x62d   : > { %2962 = vst [vmem:[%s4192_s17 + $0x130] sm:$0xff] %v2514_v43 }
 0x62e   : > { %2963 = vst [vmem:[%s4192_s17 + $0x138] sm:$0xff] %v2515_v45 }
 0x630   : > { %v2449_v46 = vpop.f32.mrb[44].mxu0 }
 0x631   : > { %v2516_v47 = vmax.f32 %v2449_v46, 0.0  ;;  %v2091_v48 = vpop.f32.mrb[32].mxu1  ;;  %v2451_v49 = vpop.f32.mrb[45].mxu0 }
 0x632   : > { %v2170_v50 = vmax.f32 %v2091_v48, 0.0  ;;  %v2517_v51 = vmax.f32 %v2451_v49, 0.0  ;;  %v2093_v52 = vpop.f32.mrb[33].mxu1  ;;  %v2453_v53 = vpop.f32.mrb[46].mxu0 }
 0x633   : > { %2964 = vst [vmem:[%s4192_s17 + $0x140] sm:$0xff] %v2516_v47  ;;  %v2171_v54 = vmax.f32 %v2093_v52, 0.0  ;;  %v2518_v55 = vmax.f32 %v2453_v53, 0.0  ;;  %v2095_v56 = vpop.f32.mrb[34].mxu1  ;;  %v2455_v57 = vpop.f32.mrb[47].mxu0 }
 0x634   : > { %2540 = vst [vmem:[%s4192_s17] sm:$0xff] %v2170_v50  ;;  %2965 = vst [vmem:[%s4192_s17 + $0x148] sm:$0xff] %v2517_v51  ;;  %v2172_v58 = vmax.f32 %v2095_v56, 0.0  ;;  %v2519_v59 = vmax.f32 %v2455_v57, 0.0  ;;  %v2097_v60 = vpop.f32.mrb[35].mxu1 }
 0x635   : > { %2541 = vst [vmem:[%s4192_s17 + $0x8] sm:$0xff] %v2171_v54  ;;  %2966 = vst [vmem:[%s4192_s17 + $0x150] sm:$0xff] %v2518_v55  ;;  %v2173_v61 = vmax.f32 %v2097_v60, 0.0 }
 0x636   : > { %2542 = vst [vmem:[%s4192_s17 + $0x10] sm:$0xff] %v2172_v58  ;;  %2967 = vst [vmem:[%s4192_s17 + $0x158] sm:$0xff] %v2519_v59 }
 0x637   : > { %2543 = vst [vmem:[%s4192_s17 + $0x18] sm:$0xff] %v2173_v61 }
 0x638   : > { %v2459_v62 = vpop.f32.mrb[48].mxu0 }
 0x639   : > { %v2520_v63 = vmax.f32 %v2459_v62, 0.0  ;;  %v2101_v0 = vpop.f32.mrb[36].mxu1  ;;  %v2461_v1 = vpop.f32.mrb[49].mxu0 }
 0x63a   : > { %v2174_v2 = vmax.f32 %v2101_v0, 0.0  ;;  %v2521_v3 = vmax.f32 %v2461_v1, 0.0  ;;  %v2103_v4 = vpop.f32.mrb[37].mxu1  ;;  %v2463_v5 = vpop.f32.mrb[50].mxu0 }
 0x63b   : > { %2968 = vst [vmem:[%s4192_s17 + $0x160] sm:$0xff] %v2520_v63  ;;  %v2175_v6 = vmax.f32 %v2103_v4, 0.0  ;;  %v2522_v7 = vmax.f32 %v2463_v5, 0.0  ;;  %v2105_v8 = vpop.f32.mrb[38].mxu1  ;;  %v2465_v9 = vpop.f32.mrb[51].mxu0 }
 0x63c   : > { %2544 = vst [vmem:[%s4192_s17 + $0x20] sm:$0xff] %v2174_v2  ;;  %2969 = vst [vmem:[%s4192_s17 + $0x168] sm:$0xff] %v2521_v3  ;;  %v2176_v10 = vmax.f32 %v2105_v8, 0.0  ;;  %v2523_v11 = vmax.f32 %v2465_v9, 0.0  ;;  %v2107_v12 = vpop.f32.mrb[39].mxu1 }
 0x63d   : > { %2545 = vst [vmem:[%s4192_s17 + $0x28] sm:$0xff] %v2175_v6  ;;  %2970 = vst [vmem:[%s4192_s17 + $0x170] sm:$0xff] %v2522_v7  ;;  %v2177_v13 = vmax.f32 %v2107_v12, 0.0 }
 0x63e   : > { %2546 = vst [vmem:[%s4192_s17 + $0x30] sm:$0xff] %v2176_v10  ;;  %2971 = vst [vmem:[%s4192_s17 + $0x178] sm:$0xff] %v2523_v11 }
 0x63f   : > { %2547 = vst [vmem:[%s4192_s17 + $0x38] sm:$0xff] %v2177_v13 }
 0x640   : > { %v2469_v14 = vpop.f32.mrb[52].mxu0 }
 0x641   : > { %v2524_v15 = vmax.f32 %v2469_v14, 0.0  ;;  %v2111_v16 = vpop.f32.mrb[40].mxu1  ;;  %v2471_v17 = vpop.f32.mrb[53].mxu0 }
 0x642   : > { %v2178_v18 = vmax.f32 %v2111_v16, 0.0  ;;  %v2525_v19 = vmax.f32 %v2471_v17, 0.0  ;;  %v2113_v20 = vpop.f32.mrb[41].mxu1  ;;  %v2473_v21 = vpop.f32.mrb[54].mxu0 }
 0x643   : > { %2972 = vst [vmem:[%s4192_s17 + $0x180] sm:$0xff] %v2524_v15  ;;  %v2179_v23 = vmax.f32 %v2113_v20, 0.0  ;;  %v2526_v24 = vmax.f32 %v2473_v21, 0.0  ;;  %v2115_v25 = vpop.f32.mrb[42].mxu1  ;;  %v2475_v26 = vpop.f32.mrb[55].mxu0 }
 0x644   : > { %2548 = vst [vmem:[%s4192_s17 + $0x40] sm:$0xff] %v2178_v18  ;;  %2973 = vst [vmem:[%s4192_s17 + $0x188] sm:$0xff] %v2525_v19  ;;  %v2180_v27 = vmax.f32 %v2115_v25, 0.0  ;;  %v2527_v29 = vmax.f32 %v2475_v26, 0.0  ;;  %v2117_v30 = vpop.f32.mrb[43].mxu1 }
 0x645   : > { %2549 = vst [vmem:[%s4192_s17 + $0x48] sm:$0xff] %v2179_v23  ;;  %2974 = vst [vmem:[%s4192_s17 + $0x190] sm:$0xff] %v2526_v24  ;;  %v2181_v22 = vmax.f32 %v2117_v30, 0.0 }
 0x646   : > { %2550 = vst [vmem:[%s4192_s17 + $0x50] sm:$0xff] %v2180_v27  ;;  %2975 = vst [vmem:[%s4192_s17 + $0x198] sm:$0xff] %v2527_v29 }
 0x647   : > { %2551 = vst [vmem:[%s4192_s17 + $0x58] sm:$0xff] %v2181_v22 }
 0x648   : > { %v2479_v28 = vpop.f32.mrb[56].mxu0 }
 0x649   : > { %v2528_v31 = vmax.f32 %v2479_v28, 0.0  ;;  %v2121_v32 = vpop.f32.mrb[44].mxu1  ;;  %v2481_v33 = vpop.f32.mrb[57].mxu0 }
 0x64a   : > { %v2182_v34 = vmax.f32 %v2121_v32, 0.0  ;;  %v2529_v35 = vmax.f32 %v2481_v33, 0.0  ;;  %v2123_v36 = vpop.f32.mrb[45].mxu1  ;;  %v2483_v37 = vpop.f32.mrb[58].mxu0 }
 0x64b   : > { %2976 = vst [vmem:[%s4192_s17 + $0x1a0] sm:$0xff] %v2528_v31  ;;  %v2183_v38 = vmax.f32 %v2123_v36, 0.0  ;;  %v2530_v39 = vmax.f32 %v2483_v37, 0.0  ;;  %v2125_v40 = vpop.f32.mrb[46].mxu1  ;;  %v2485_v41 = vpop.f32.mrb[59].mxu0 }
 0x64c   : > { %2552 = vst [vmem:[%s4192_s17 + $0x60] sm:$0xff] %v2182_v34  ;;  %2977 = vst [vmem:[%s4192_s17 + $0x1a8] sm:$0xff] %v2529_v35  ;;  %v2184_v42 = vmax.f32 %v2125_v40, 0.0  ;;  %v2531_v43 = vmax.f32 %v2485_v41, 0.0  ;;  %v2127_v44 = vpop.f32.mrb[47].mxu1 }
 0x64d   : > { %2553 = vst [vmem:[%s4192_s17 + $0x68] sm:$0xff] %v2183_v38  ;;  %2978 = vst [vmem:[%s4192_s17 + $0x1b0] sm:$0xff] %v2530_v39  ;;  %v2185_v45 = vmax.f32 %v2127_v44, 0.0 }
 0x64e   : > { %2554 = vst [vmem:[%s4192_s17 + $0x70] sm:$0xff] %v2184_v42  ;;  %2979 = vst [vmem:[%s4192_s17 + $0x1b8] sm:$0xff] %v2531_v43 }
 0x64f   : > { %2555 = vst [vmem:[%s4192_s17 + $0x78] sm:$0xff] %v2185_v45 }
 0x650   : > { %v2489_v46 = vpop.f32.mrb[60].mxu0 }
 0x651   : > { %v2532_v47 = vmax.f32 %v2489_v46, 0.0  ;;  %v2131_v48 = vpop.f32.mrb[48].mxu1  ;;  %v2491_v49 = vpop.f32.mrb[61].mxu0 }
 0x652   : > { %v2186_v50 = vmax.f32 %v2131_v48, 0.0  ;;  %v2533_v51 = vmax.f32 %v2491_v49, 0.0  ;;  %v2133_v52 = vpop.f32.mrb[49].mxu1  ;;  %v2493_v53 = vpop.f32.mrb[62].mxu0 }
 0x653   : > { %2980 = vst [vmem:[%s4192_s17 + $0x1c0] sm:$0xff] %v2532_v47  ;;  %v2187_v54 = vmax.f32 %v2133_v52, 0.0  ;;  %v2534_v55 = vmax.f32 %v2493_v53, 0.0  ;;  %v2135_v56 = vpop.f32.mrb[50].mxu1  ;;  %v2495_v57 = vpop.f32.mrb[63].mxu0 }
 0x654   : > { %2556 = vst [vmem:[%s4192_s17 + $0x80] sm:$0xff] %v2186_v50  ;;  %2981 = vst [vmem:[%s4192_s17 + $0x1c8] sm:$0xff] %v2533_v51  ;;  %v2188_v58 = vmax.f32 %v2135_v56, 0.0  ;;  %v2535_v59 = vmax.f32 %v2495_v57, 0.0  ;;  %v2137_v60 = vpop.f32.mrb[51].mxu1 }
 0x655   : > { %2557 = vst [vmem:[%s4192_s17 + $0x88] sm:$0xff] %v2187_v54  ;;  %2982 = vst [vmem:[%s4192_s17 + $0x1d0] sm:$0xff] %v2534_v55  ;;  %v2189_v61 = vmax.f32 %v2137_v60, 0.0 }
 0x656   : > { %2558 = vst [vmem:[%s4192_s17 + $0x90] sm:$0xff] %v2188_v58  ;;  %2983 = vst [vmem:[%s4192_s17 + $0x1d8] sm:$0xff] %v2535_v59 }
 0x657   : > { %2559 = vst [vmem:[%s4192_s17 + $0x98] sm:$0xff] %v2189_v61 }
 0x658   : > { %v2499_v62 = vpop.f32.mrb[64].mxu0 }
 0x659   : > { %v2536_v63 = vmax.f32 %v2499_v62, 0.0  ;;  %v2141_v0 = vpop.f32.mrb[52].mxu1  ;;  %v2501_v1 = vpop.f32.mrb[65].mxu0 }
 0x65a   : > { %v2190_v2 = vmax.f32 %v2141_v0, 0.0  ;;  %v2537_v3 = vmax.f32 %v2501_v1, 0.0  ;;  %v2143_v4 = vpop.f32.mrb[53].mxu1  ;;  %v2503_v5 = vpop.f32.mrb[66].mxu0 }
 0x65b   : > { %2984 = vst [vmem:[%s4192_s17 + $0x1e0] sm:$0xff] %v2536_v63  ;;  %v2191_v6 = vmax.f32 %v2143_v4, 0.0  ;;  %v2538_v7 = vmax.f32 %v2503_v5, 0.0  ;;  %v2145_v8 = vpop.f32.mrb[54].mxu1  ;;  %v2505_v9 = vpop.f32.mrb[67].mxu0 }
 0x65c   : > { %2560 = vst [vmem:[%s4192_s17 + $0xa0] sm:$0xff] %v2190_v2  ;;  %2985 = vst [vmem:[%s4192_s17 + $0x1e8] sm:$0xff] %v2537_v3  ;;  %v2192_v10 = vmax.f32 %v2145_v8, 0.0  ;;  %v2539_v11 = vmax.f32 %v2505_v9, 0.0  ;;  %v2147_v12 = vpop.f32.mrb[55].mxu1 }
 0x65d   : > { %2561 = vst [vmem:[%s4192_s17 + $0xa8] sm:$0xff] %v2191_v6  ;;  %2986 = vst [vmem:[%s4192_s17 + $0x1f0] sm:$0xff] %v2538_v7  ;;  %v2193_v13 = vmax.f32 %v2147_v12, 0.0 }
 0x65e   : > { %2562 = vst [vmem:[%s4192_s17 + $0xb0] sm:$0xff] %v2192_v10  ;;  %2987 = vst [vmem:[%s4192_s17 + $0x1f8] sm:$0xff] %v2539_v11 }
 0x65f   : > { %2563 = vst [vmem:[%s4192_s17 + $0xb8] sm:$0xff] %v2193_v13 }
 0x661   : > { %v2151_v14 = vpop.f32.mrb[56].mxu1 }
 0x662   : > { %v2194_v15 = vmax.f32 %v2151_v14, 0.0  ;;  %v2153_v16 = vpop.f32.mrb[57].mxu1 }
 0x663   : > { %v2195_v17 = vmax.f32 %v2153_v16, 0.0  ;;  %v2155_v18 = vpop.f32.mrb[58].mxu1 }
 0x664   : > { %2564 = vst [vmem:[%s4192_s17 + $0xc0] sm:$0xff] %v2194_v15  ;;  %v2196_v19 = vmax.f32 %v2155_v18, 0.0  ;;  %v2157_v20 = vpop.f32.mrb[59].mxu1 }
 0x665   : > { %2565 = vst [vmem:[%s4192_s17 + $0xc8] sm:$0xff] %v2195_v17  ;;  %v2197_v21 = vmax.f32 %v2157_v20, 0.0 }
 0x666   : > { %2566 = vst [vmem:[%s4192_s17 + $0xd0] sm:$0xff] %v2196_v19 }
 0x667   : > { %2567 = vst [vmem:[%s4192_s17 + $0xd8] sm:$0xff] %v2197_v21 }
 0x669   : > { %v2161_v23 = vpop.f32.mrb[60].mxu1 }
 0x66a   : > { %v2198_v24 = vmax.f32 %v2161_v23, 0.0  ;;  %v2163_v25 = vpop.f32.mrb[61].mxu1 }
 0x66b   : > { %v2199_v26 = vmax.f32 %v2163_v25, 0.0  ;;  %v2165_v27 = vpop.f32.mrb[62].mxu1 }
 0x66c   : > { %2568 = vst [vmem:[%s4192_s17 + $0xe0] sm:$0xff] %v2198_v24  ;;  %v2200_v29 = vmax.f32 %v2165_v27, 0.0  ;;  %v2167_v30 = vpop.f32.mrb[63].mxu1 }
 0x66d   : > { %2569 = vst [vmem:[%s4192_s17 + $0xe8] sm:$0xff] %v2199_v26  ;;  %v2201_v22 = vmax.f32 %v2167_v30, 0.0 }
 0x66e   : > { %2570 = vst [vmem:[%s4192_s17 + $0xf0] sm:$0xff] %v2200_v29 }
 0x66f   : > { %2571 = vst [vmem:[%s4192_s17 + $0xf8] sm:$0xff] %v2201_v22 }
 0x670 PF: > { %p22_p8 = scmp.ge.s32.totalorder %s4059_s22, 4   ;;  %s4304_s27 = smov %s3787_s28 }
 0x671   : > { %s4305_s28 = smov %s3791_s29  ;;  %s4306_s29 = smov %s4070_s1 }
 0x672   : > { %s4307_s30 = smov %s4059_s22  ;;  %24 = sbr.rel (!%p22_p8) target bundleno = 9 (0x9), region = 125 }
 0x679   :  { %2626 = vsyncpa [#allocation3], 1 }
 0x67a   :  { %2628 = vsyncpa [#allocation3 + $0x1], 1 }
 0x67b   :  { %2629 = vsyncpa [#allocation5], 1 }
 0x67c   :  { %2630 = vsyncpa [#allocation8], 1 }
 0x67d   :  { %2631 = vsyncpa [#allocation11], 1 }
 0x67e   :  { %2632 = vsyncpa [#allocation14], 1 }

</bundles_post_ra>
